<compile_context>
chip_gen: v6e
topology: v6e:2x2x1
jax: 0.10.0
libtpu: 0.0.40
codegen_flags: <defaults>
</compile_context>

<pallas_src>
import jax
import jax.numpy as jnp
from jax.experimental import pallas as pl
from jax.experimental.pallas import tpu as pltpu


def rnn_fc_kernel(x_ref, h0_ref,
                  wih0_ref, whh0_ref, b0_ref,
                  wih1_ref, whh1_ref, b1_ref,
                  fcw_ref, fcb_ref,
                  out_ref, hid_ref):
    """2-layer Elman RNN (tanh) over all timesteps + fused final Linear."""
    T, B, I = x_ref.shape
    H = h0_ref.shape[2]

    # ---- Layer 0: batched input projection (hoisted out of the recurrence) ----
    x2d = x_ref[...].reshape(T * B, I)                       # bf16 (T*B, I)
    xproj0 = jnp.dot(x2d, wih0_ref[...],
                     preferred_element_type=jnp.float32)     # (T*B, H) f32
    xproj0 = xproj0 + b0_ref[...]                            # bias added once

    whh0 = whh0_ref[...]                                     # bf16 (H, H)
    h0 = h0_ref[0]                                           # f32  (B, H)
    h0_list = []
    for t in range(T):                                       # serial recurrence
        h0 = jnp.tanh(
            xproj0[t * B:(t + 1) * B, :]
            + jnp.dot(h0.astype(jnp.bfloat16), whh0,
                      preferred_element_type=jnp.float32))
        h0_list.append(h0)

    # ---- Layer 1: batched input projection over all layer-0 outputs ----
    h0_all = jnp.concatenate(h0_list, axis=0)                # (T*B, H) f32
    xproj1 = jnp.dot(h0_all.astype(jnp.bfloat16), wih1_ref[...],
                     preferred_element_type=jnp.float32) + b1_ref[...]

    whh1 = whh1_ref[...]                                     # bf16 (H, H)
    h1 = h0_ref[1]                                           # f32  (B, H)
    h1_list = []
    for t in range(T):                                       # serial recurrence
        h1 = jnp.tanh(
            xproj1[t * B:(t + 1) * B, :]
            + jnp.dot(h1.astype(jnp.bfloat16), whh1,
                      preferred_element_type=jnp.float32))
        h1_list.append(h1)

    # ---- Fused fc: one (B, T*H) @ (T*H, O_pad) matmul, K = T*H ----
    # column block t of r_out == h1_t  <=>  reshape(stack_t(h1_t), (B, T*H))
    r_out = jnp.concatenate(h1_list, axis=1)                 # (B, T*H) f32
    out = jnp.dot(r_out.astype(jnp.bfloat16), fcw_ref[...],
                  preferred_element_type=jnp.float32) + fcb_ref[...]

    out_ref[...] = out.astype(out_ref.dtype)                 # lane-dense store
    hid_ref[0] = h0.astype(hid_ref.dtype)
    hid_ref[1] = h1.astype(hid_ref.dtype)


def rnn_forward(x, hidden, params):
    """Wrapper mirroring RNN.forward(x, hidden) -> (output, hidden)."""
    B, T, I = x.shape
    L, _, H = hidden.shape
    O = params["fc_b"].shape[0]
    O_pad = ((O + 127) // 128) * 128          # lane-dense output, sliced below

    # Glue (plain JAX): transpose x to (T, B, I); pre-transpose, pre-combine,
    # and pre-cast matmul operands to bf16.  Biases stay f32.
    x_tbi = jnp.transpose(x, (1, 0, 2)).astype(jnp.bfloat16)
    wih0T = params["w_ih0"].T.astype(jnp.bfloat16)            # (I, H)
    whh0T = params["w_hh0"].T.astype(jnp.bfloat16)            # (H, H)
    b0 = (params["b_ih0"] + params["b_hh0"]).reshape(1, H)
    wih1T = params["w_ih1"].T.astype(jnp.bfloat16)            # (H, H)
    whh1T = params["w_hh1"].T.astype(jnp.bfloat16)            # (H, H)
    b1 = (params["b_ih1"] + params["b_hh1"]).reshape(1, H)
    fcwT = jnp.pad(params["fc_w"].T, ((0, 0), (0, O_pad - O))
                   ).astype(jnp.bfloat16)                     # (T*H, O_pad)
    fcb = jnp.pad(params["fc_b"], (0, O_pad - O)).reshape(1, O_pad)

    vmem = pl.BlockSpec(memory_space=pltpu.MemorySpace.VMEM)
    # TODO(synk): when B grows, add a batch grid with
    # dimension_semantics=("parallel",) so the second v7x TensorCore is used.
    out_pad, hid = pl.pallas_call(
        rnn_fc_kernel,
        out_shape=(jax.ShapeDtypeStruct((B, O_pad), jnp.float32),
                   jax.ShapeDtypeStruct((L, B, H), jnp.float32)),
        in_specs=[vmem] * 10,
        out_specs=(vmem, vmem),
    )(x_tbi, hidden, wih0T, whh0T, b0, wih1T, whh1T, b1, fcwT, fcb)
    return out_pad[:, :O], hid


def rnn_forward_ref(x, hidden, params):
    """Pure-JAX f32 reference (semantics of torch.nn.RNN + Linear)."""
    B, T, I = x.shape
    H = hidden.shape[2]
    h0, h1 = hidden[0], hidden[1]
    outs = []
    for t in range(T):
        x_t = x[:, t, :]
        h0 = jnp.tanh(x_t @ params["w_ih0"].T + params["b_ih0"]
                      + h0 @ params["w_hh0"].T + params["b_hh0"])
        h1 = jnp.tanh(h0 @ params["w_ih1"].T + params["b_ih1"]
                      + h1 @ params["w_hh1"].T + params["b_hh1"])
        outs.append(h1)
    r_out = jnp.stack(outs, axis=1).reshape(B, -1)
    out = r_out @ params["fc_w"].T + params["fc_b"]
    return out, jnp.stack([h0, h1], axis=0)


def init_params(key, input_size, hidden_dim, time_steps, output_size):
    ks = jax.random.split(key, 10)
    s = 1.0 / jnp.sqrt(hidden_dim)
    u = lambda k, shape: jax.random.uniform(k, shape, jnp.float32, -s, s)
    return {
        "w_ih0": u(ks[0], (hidden_dim, input_size)),
        "w_hh0": u(ks[1], (hidden_dim, hidden_dim)),
        "b_ih0": u(ks[2], (hidden_dim,)),
        "b_hh0": u(ks[3], (hidden_dim,)),
        "w_ih1": u(ks[4], (hidden_dim, hidden_dim)),
        "w_hh1": u(ks[5], (hidden_dim, hidden_dim)),
        "b_ih1": u(ks[6], (hidden_dim,)),
        "b_hh1": u(ks[7], (hidden_dim,)),
        "fc_w": u(ks[8], (output_size, time_steps * hidden_dim)),
        "fc_b": u(ks[9], (output_size,)),
    }


if __name__ == "__main__":
    # Small shapes consistent with the module (n_layers=2, batch_first RNN,
    # hidden_dim/output_size from the spec; input_size kept small).
    batch, time_steps = 2, 8
    input_size, hidden_dim, n_layers, output_size = 128, 64, 2, 303

    key = jax.random.PRNGKey(0)
    k_x, k_h, k_p = jax.random.split(key, 3)
    x = jax.random.normal(k_x, (batch, time_steps, input_size), jnp.float32)
    hidden = jax.random.normal(k_h, (n_layers, batch, hidden_dim), jnp.float32)
    params = init_params(k_p, input_size, hidden_dim, time_steps, output_size)

    out, hid = jax.block_until_ready(rnn_forward(x, hidden, params))
    out_ref, hid_ref = rnn_forward_ref(x, hidden, params)

    assert out.shape == (batch, output_size)
    assert hid.shape == (n_layers, batch, hidden_dim)
    # bf16 MXU operands (f32 accumulation) -> looser tolerance than pure f32.
    assert jnp.allclose(out, out_ref, atol=5e-2, rtol=5e-2)
    assert jnp.allclose(hid, hid_ref, atol=5e-2, rtol=5e-2)
    print("KERNEL_OK")
</pallas_src>

<mosaic_0001>
module attributes {stable_mosaic.version = 11 : i64} {
  func.func @rnn_fc_kernel(%arg0: memref<8x2x128xbf16, #tpu.memory_space<vmem>>, %arg1: memref<2x2x64xf32, #tpu.memory_space<vmem>>, %arg2: memref<128x64xbf16, #tpu.memory_space<vmem>>, %arg3: memref<64x64xbf16, #tpu.memory_space<vmem>>, %arg4: memref<1x64xf32, #tpu.memory_space<vmem>>, %arg5: memref<64x64xbf16, #tpu.memory_space<vmem>>, %arg6: memref<64x64xbf16, #tpu.memory_space<vmem>>, %arg7: memref<1x64xf32, #tpu.memory_space<vmem>>, %arg8: memref<512x384xbf16, #tpu.memory_space<vmem>>, %arg9: memref<1x384xf32, #tpu.memory_space<vmem>>, %arg10: memref<2x384xf32, #tpu.memory_space<vmem>>, %arg11: memref<2x2x64xf32, #tpu.memory_space<vmem>>) attributes {dimension_semantics = [], scalar_prefetch = 0 : i64, scratch_operands = 0 : i64, tpu.core_type = #tpu.core_type<tc>} {
    %c0 = arith.constant 0 : index
    %c0_0 = arith.constant 0 : index
    %c0_1 = arith.constant 0 : index
    %0 = vector.load %arg0[%c0, %c0_0, %c0_1] : memref<8x2x128xbf16, #tpu.memory_space<vmem>>, vector<8x2x128xbf16>
    %1 = vector.shape_cast %0 : vector<8x2x128xbf16> to vector<16x128xbf16>
    %c0_2 = arith.constant 0 : index
    %c0_3 = arith.constant 0 : index
    %2 = vector.load %arg2[%c0_2, %c0_3] : memref<128x64xbf16, #tpu.memory_space<vmem>>, vector<128x64xbf16>
    %cst = arith.constant dense<0.000000e+00> : vector<16x64xf32>
    %3 = tpu.matmul %1, %2, %cst {dimension_numbers = #tpu.dot_dimension_numbers<[1], [0], [0], [1], [0, 0, 1, 1], [], []>} : vector<16x128xbf16>, vector<128x64xbf16>, vector<16x64xf32> -> vector<16x64xf32>
    %c0_4 = arith.constant 0 : index
    %c0_5 = arith.constant 0 : index
    %4 = vector.load %arg4[%c0_4, %c0_5] : memref<1x64xf32, #tpu.memory_space<vmem>>, vector<1x64xf32>
    %5 = vector.broadcast %4 : vector<1x64xf32> to vector<16x64xf32>
    %6 = arith.addf %3, %5 : vector<16x64xf32>
    %c0_6 = arith.constant 0 : index
    %c0_7 = arith.constant 0 : index
    %7 = vector.load %arg3[%c0_6, %c0_7] : memref<64x64xbf16, #tpu.memory_space<vmem>>, vector<64x64xbf16>
    %c0_8 = arith.constant 0 : index
    %c0_9 = arith.constant 0 : index
    %c0_10 = arith.constant 0 : index
    %8 = vector.load %arg1[%c0_8, %c0_9, %c0_10] : memref<2x2x64xf32, #tpu.memory_space<vmem>>, vector<1x2x64xf32>
    %9 = vector.shape_cast %8 : vector<1x2x64xf32> to vector<2x64xf32>
    %10 = vector.extract_strided_slice %6 {offsets = [0, 0], sizes = [2, 64], strides = [1, 1]} : vector<16x64xf32> to vector<2x64xf32>
    %11 = arith.truncf %9 : vector<2x64xf32> to vector<2x64xbf16>
    %cst_11 = arith.constant dense<0.000000e+00> : vector<2x64xf32>
    %12 = tpu.matmul %11, %7, %cst_11 {dimension_numbers = #tpu.dot_dimension_numbers<[1], [0], [0], [1], [0, 0, 1, 1], [], []>} : vector<2x64xbf16>, vector<64x64xbf16>, vector<2x64xf32> -> vector<2x64xf32>
    %13 = arith.addf %10, %12 : vector<2x64xf32>
    %14 = math.tanh %13 : vector<2x64xf32>
    %15 = vector.extract_strided_slice %6 {offsets = [2, 0], sizes = [2, 64], strides = [1, 1]} : vector<16x64xf32> to vector<2x64xf32>
    %16 = arith.truncf %14 : vector<2x64xf32> to vector<2x64xbf16>
    %cst_12 = arith.constant dense<0.000000e+00> : vector<2x64xf32>
    %17 = tpu.matmul %16, %7, %cst_12 {dimension_numbers = #tpu.dot_dimension_numbers<[1], [0], [0], [1], [0, 0, 1, 1], [], []>} : vector<2x64xbf16>, vector<64x64xbf16>, vector<2x64xf32> -> vector<2x64xf32>
    %18 = arith.addf %15, %17 : vector<2x64xf32>
    %19 = math.tanh %18 : vector<2x64xf32>
    %20 = vector.extract_strided_slice %6 {offsets = [4, 0], sizes = [2, 64], strides = [1, 1]} : vector<16x64xf32> to vector<2x64xf32>
    %21 = arith.truncf %19 : vector<2x64xf32> to vector<2x64xbf16>
    %cst_13 = arith.constant dense<0.000000e+00> : vector<2x64xf32>
    %22 = tpu.matmul %21, %7, %cst_13 {dimension_numbers = #tpu.dot_dimension_numbers<[1], [0], [0], [1], [0, 0, 1, 1], [], []>} : vector<2x64xbf16>, vector<64x64xbf16>, vector<2x64xf32> -> vector<2x64xf32>
    %23 = arith.addf %20, %22 : vector<2x64xf32>
    %24 = math.tanh %23 : vector<2x64xf32>
    %25 = vector.extract_strided_slice %6 {offsets = [6, 0], sizes = [2, 64], strides = [1, 1]} : vector<16x64xf32> to vector<2x64xf32>
    %26 = arith.truncf %24 : vector<2x64xf32> to vector<2x64xbf16>
    %cst_14 = arith.constant dense<0.000000e+00> : vector<2x64xf32>
    %27 = tpu.matmul %26, %7, %cst_14 {dimension_numbers = #tpu.dot_dimension_numbers<[1], [0], [0], [1], [0, 0, 1, 1], [], []>} : vector<2x64xbf16>, vector<64x64xbf16>, vector<2x64xf32> -> vector<2x64xf32>
    %28 = arith.addf %25, %27 : vector<2x64xf32>
    %29 = math.tanh %28 : vector<2x64xf32>
    %30 = vector.extract_strided_slice %6 {offsets = [8, 0], sizes = [2, 64], strides = [1, 1]} : vector<16x64xf32> to vector<2x64xf32>
    %31 = arith.truncf %29 : vector<2x64xf32> to vector<2x64xbf16>
    %cst_15 = arith.constant dense<0.000000e+00> : vector<2x64xf32>
    %32 = tpu.matmul %31, %7, %cst_15 {dimension_numbers = #tpu.dot_dimension_numbers<[1], [0], [0], [1], [0, 0, 1, 1], [], []>} : vector<2x64xbf16>, vector<64x64xbf16>, vector<2x64xf32> -> vector<2x64xf32>
    %33 = arith.addf %30, %32 : vector<2x64xf32>
    %34 = math.tanh %33 : vector<2x64xf32>
    %35 = vector.extract_strided_slice %6 {offsets = [10, 0], sizes = [2, 64], strides = [1, 1]} : vector<16x64xf32> to vector<2x64xf32>
    %36 = arith.truncf %34 : vector<2x64xf32> to vector<2x64xbf16>
    %cst_16 = arith.constant dense<0.000000e+00> : vector<2x64xf32>
    %37 = tpu.matmul %36, %7, %cst_16 {dimension_numbers = #tpu.dot_dimension_numbers<[1], [0], [0], [1], [0, 0, 1, 1], [], []>} : vector<2x64xbf16>, vector<64x64xbf16>, vector<2x64xf32> -> vector<2x64xf32>
    %38 = arith.addf %35, %37 : vector<2x64xf32>
    %39 = math.tanh %38 : vector<2x64xf32>
    %40 = vector.extract_strided_slice %6 {offsets = [12, 0], sizes = [2, 64], strides = [1, 1]} : vector<16x64xf32> to vector<2x64xf32>
    %41 = arith.truncf %39 : vector<2x64xf32> to vector<2x64xbf16>
    %cst_17 = arith.constant dense<0.000000e+00> : vector<2x64xf32>
    %42 = tpu.matmul %41, %7, %cst_17 {dimension_numbers = #tpu.dot_dimension_numbers<[1], [0], [0], [1], [0, 0, 1, 1], [], []>} : vector<2x64xbf16>, vector<64x64xbf16>, vector<2x64xf32> -> vector<2x64xf32>
    %43 = arith.addf %40, %42 : vector<2x64xf32>
    %44 = math.tanh %43 : vector<2x64xf32>
    %45 = vector.extract_strided_slice %6 {offsets = [14, 0], sizes = [2, 64], strides = [1, 1]} : vector<16x64xf32> to vector<2x64xf32>
    %46 = arith.truncf %44 : vector<2x64xf32> to vector<2x64xbf16>
    %cst_18 = arith.constant dense<0.000000e+00> : vector<2x64xf32>
    %47 = tpu.matmul %46, %7, %cst_18 {dimension_numbers = #tpu.dot_dimension_numbers<[1], [0], [0], [1], [0, 0, 1, 1], [], []>} : vector<2x64xbf16>, vector<64x64xbf16>, vector<2x64xf32> -> vector<2x64xf32>
    %48 = arith.addf %45, %47 : vector<2x64xf32>
    %49 = math.tanh %48 : vector<2x64xf32>
    %50 = tpu.concatenate %14, %19, %24, %29, %34, %39, %44, %49 in 0 : vector<2x64xf32>, vector<2x64xf32>, vector<2x64xf32>, vector<2x64xf32>, vector<2x64xf32>, vector<2x64xf32>, vector<2x64xf32>, vector<2x64xf32> -> vector<16x64xf32>
    %51 = arith.truncf %50 : vector<16x64xf32> to vector<16x64xbf16>
    %c0_19 = arith.constant 0 : index
    %c0_20 = arith.constant 0 : index
    %52 = vector.load %arg5[%c0_19, %c0_20] : memref<64x64xbf16, #tpu.memory_space<vmem>>, vector<64x64xbf16>
    %cst_21 = arith.constant dense<0.000000e+00> : vector<16x64xf32>
    %53 = tpu.matmul %51, %52, %cst_21 {dimension_numbers = #tpu.dot_dimension_numbers<[1], [0], [0], [1], [0, 0, 1, 1], [], []>} : vector<16x64xbf16>, vector<64x64xbf16>, vector<16x64xf32> -> vector<16x64xf32>
    %c0_22 = arith.constant 0 : index
    %c0_23 = arith.constant 0 : index
    %54 = vector.load %arg7[%c0_22, %c0_23] : memref<1x64xf32, #tpu.memory_space<vmem>>, vector<1x64xf32>
    %55 = vector.broadcast %54 : vector<1x64xf32> to vector<16x64xf32>
    %56 = arith.addf %53, %55 : vector<16x64xf32>
    %c0_24 = arith.constant 0 : index
    %c0_25 = arith.constant 0 : index
    %57 = vector.load %arg6[%c0_24, %c0_25] : memref<64x64xbf16, #tpu.memory_space<vmem>>, vector<64x64xbf16>
    %c1 = arith.constant 1 : index
    %c0_26 = arith.constant 0 : index
    %c0_27 = arith.constant 0 : index
    %58 = vector.load %arg1[%c1, %c0_26, %c0_27] : memref<2x2x64xf32, #tpu.memory_space<vmem>>, vector<1x2x64xf32>
    %59 = vector.shape_cast %58 : vector<1x2x64xf32> to vector<2x64xf32>
    %60 = vector.extract_strided_slice %56 {offsets = [0, 0], sizes = [2, 64], strides = [1, 1]} : vector<16x64xf32> to vector<2x64xf32>
    %61 = arith.truncf %59 : vector<2x64xf32> to vector<2x64xbf16>
    %cst_28 = arith.constant dense<0.000000e+00> : vector<2x64xf32>
    %62 = tpu.matmul %61, %57, %cst_28 {dimension_numbers = #tpu.dot_dimension_numbers<[1], [0], [0], [1], [0, 0, 1, 1], [], []>} : vector<2x64xbf16>, vector<64x64xbf16>, vector<2x64xf32> -> vector<2x64xf32>
    %63 = arith.addf %60, %62 : vector<2x64xf32>
    %64 = math.tanh %63 : vector<2x64xf32>
    %65 = vector.extract_strided_slice %56 {offsets = [2, 0], sizes = [2, 64], strides = [1, 1]} : vector<16x64xf32> to vector<2x64xf32>
    %66 = arith.truncf %64 : vector<2x64xf32> to vector<2x64xbf16>
    %cst_29 = arith.constant dense<0.000000e+00> : vector<2x64xf32>
    %67 = tpu.matmul %66, %57, %cst_29 {dimension_numbers = #tpu.dot_dimension_numbers<[1], [0], [0], [1], [0, 0, 1, 1], [], []>} : vector<2x64xbf16>, vector<64x64xbf16>, vector<2x64xf32> -> vector<2x64xf32>
    %68 = arith.addf %65, %67 : vector<2x64xf32>
    %69 = math.tanh %68 : vector<2x64xf32>
    %70 = vector.extract_strided_slice %56 {offsets = [4, 0], sizes = [2, 64], strides = [1, 1]} : vector<16x64xf32> to vector<2x64xf32>
    %71 = arith.truncf %69 : vector<2x64xf32> to vector<2x64xbf16>
    %cst_30 = arith.constant dense<0.000000e+00> : vector<2x64xf32>
    %72 = tpu.matmul %71, %57, %cst_30 {dimension_numbers = #tpu.dot_dimension_numbers<[1], [0], [0], [1], [0, 0, 1, 1], [], []>} : vector<2x64xbf16>, vector<64x64xbf16>, vector<2x64xf32> -> vector<2x64xf32>
    %73 = arith.addf %70, %72 : vector<2x64xf32>
    %74 = math.tanh %73 : vector<2x64xf32>
    %75 = vector.extract_strided_slice %56 {offsets = [6, 0], sizes = [2, 64], strides = [1, 1]} : vector<16x64xf32> to vector<2x64xf32>
    %76 = arith.truncf %74 : vector<2x64xf32> to vector<2x64xbf16>
    %cst_31 = arith.constant dense<0.000000e+00> : vector<2x64xf32>
    %77 = tpu.matmul %76, %57, %cst_31 {dimension_numbers = #tpu.dot_dimension_numbers<[1], [0], [0], [1], [0, 0, 1, 1], [], []>} : vector<2x64xbf16>, vector<64x64xbf16>, vector<2x64xf32> -> vector<2x64xf32>
    %78 = arith.addf %75, %77 : vector<2x64xf32>
    %79 = math.tanh %78 : vector<2x64xf32>
    %80 = vector.extract_strided_slice %56 {offsets = [8, 0], sizes = [2, 64], strides = [1, 1]} : vector<16x64xf32> to vector<2x64xf32>
    %81 = arith.truncf %79 : vector<2x64xf32> to vector<2x64xbf16>
    %cst_32 = arith.constant dense<0.000000e+00> : vector<2x64xf32>
    %82 = tpu.matmul %81, %57, %cst_32 {dimension_numbers = #tpu.dot_dimension_numbers<[1], [0], [0], [1], [0, 0, 1, 1], [], []>} : vector<2x64xbf16>, vector<64x64xbf16>, vector<2x64xf32> -> vector<2x64xf32>
    %83 = arith.addf %80, %82 : vector<2x64xf32>
    %84 = math.tanh %83 : vector<2x64xf32>
    %85 = vector.extract_strided_slice %56 {offsets = [10, 0], sizes = [2, 64], strides = [1, 1]} : vector<16x64xf32> to vector<2x64xf32>
    %86 = arith.truncf %84 : vector<2x64xf32> to vector<2x64xbf16>
    %cst_33 = arith.constant dense<0.000000e+00> : vector<2x64xf32>
    %87 = tpu.matmul %86, %57, %cst_33 {dimension_numbers = #tpu.dot_dimension_numbers<[1], [0], [0], [1], [0, 0, 1, 1], [], []>} : vector<2x64xbf16>, vector<64x64xbf16>, vector<2x64xf32> -> vector<2x64xf32>
    %88 = arith.addf %85, %87 : vector<2x64xf32>
    %89 = math.tanh %88 : vector<2x64xf32>
    %90 = vector.extract_strided_slice %56 {offsets = [12, 0], sizes = [2, 64], strides = [1, 1]} : vector<16x64xf32> to vector<2x64xf32>
    %91 = arith.truncf %89 : vector<2x64xf32> to vector<2x64xbf16>
    %cst_34 = arith.constant dense<0.000000e+00> : vector<2x64xf32>
    %92 = tpu.matmul %91, %57, %cst_34 {dimension_numbers = #tpu.dot_dimension_numbers<[1], [0], [0], [1], [0, 0, 1, 1], [], []>} : vector<2x64xbf16>, vector<64x64xbf16>, vector<2x64xf32> -> vector<2x64xf32>
    %93 = arith.addf %90, %92 : vector<2x64xf32>
    %94 = math.tanh %93 : vector<2x64xf32>
    %95 = vector.extract_strided_slice %56 {offsets = [14, 0], sizes = [2, 64], strides = [1, 1]} : vector<16x64xf32> to vector<2x64xf32>
    %96 = arith.truncf %94 : vector<2x64xf32> to vector<2x64xbf16>
    %cst_35 = arith.constant dense<0.000000e+00> : vector<2x64xf32>
    %97 = tpu.matmul %96, %57, %cst_35 {dimension_numbers = #tpu.dot_dimension_numbers<[1], [0], [0], [1], [0, 0, 1, 1], [], []>} : vector<2x64xbf16>, vector<64x64xbf16>, vector<2x64xf32> -> vector<2x64xf32>
    %98 = arith.addf %95, %97 : vector<2x64xf32>
    %99 = math.tanh %98 : vector<2x64xf32>
    %100 = tpu.concatenate %64, %69, %74, %79, %84, %89, %94, %99 in 1 : vector<2x64xf32>, vector<2x64xf32>, vector<2x64xf32>, vector<2x64xf32>, vector<2x64xf32>, vector<2x64xf32>, vector<2x64xf32>, vector<2x64xf32> -> vector<2x512xf32>
    %101 = arith.truncf %100 : vector<2x512xf32> to vector<2x512xbf16>
    %c0_36 = arith.constant 0 : index
    %c0_37 = arith.constant 0 : index
    %102 = vector.load %arg8[%c0_36, %c0_37] : memref<512x384xbf16, #tpu.memory_space<vmem>>, vector<512x384xbf16>
    %cst_38 = arith.constant dense<0.000000e+00> : vector<2x384xf32>
    %103 = tpu.matmul %101, %102, %cst_38 {dimension_numbers = #tpu.dot_dimension_numbers<[1], [0], [0], [1], [0, 0, 1, 1], [], []>} : vector<2x512xbf16>, vector<512x384xbf16>, vector<2x384xf32> -> vector<2x384xf32>
    %c0_39 = arith.constant 0 : index
    %c0_40 = arith.constant 0 : index
    %104 = vector.load %arg9[%c0_39, %c0_40] : memref<1x384xf32, #tpu.memory_space<vmem>>, vector<1x384xf32>
    %105 = vector.broadcast %104 : vector<1x384xf32> to vector<2x384xf32>
    %106 = arith.addf %103, %105 : vector<2x384xf32>
    %c0_41 = arith.constant 0 : index
    %c0_42 = arith.constant 0 : index
    %107 = vector.load %arg10[%c0_41, %c0_42] : memref<2x384xf32, #tpu.memory_space<vmem>>, vector<2x384xf32>
    tpu.vector_store %arg10[%c0_41, %c0_42], %106 {strides = array<i32>} : memref<2x384xf32, #tpu.memory_space<vmem>>, vector<2x384xf32>,
    %c0_43 = arith.constant 0 : index
    %c0_44 = arith.constant 0 : index
    %c0_45 = arith.constant 0 : index
    %108 = vector.load %arg11[%c0_43, %c0_44, %c0_45] : memref<2x2x64xf32, #tpu.memory_space<vmem>>, vector<1x2x64xf32>
    %109 = vector.shape_cast %108 : vector<1x2x64xf32> to vector<2x64xf32>
    %110 = vector.shape_cast %49 : vector<2x64xf32> to vector<1x2x64xf32>
    tpu.vector_store %arg11[%c0_43, %c0_44, %c0_45], %110 {strides = array<i32>} : memref<2x2x64xf32, #tpu.memory_space<vmem>>, vector<1x2x64xf32>,
    %c1_46 = arith.constant 1 : index
    %c0_47 = arith.constant 0 : index
    %c0_48 = arith.constant 0 : index
    %111 = vector.load %arg11[%c1_46, %c0_47, %c0_48] : memref<2x2x64xf32, #tpu.memory_space<vmem>>, vector<1x2x64xf32>
    %112 = vector.shape_cast %111 : vector<1x2x64xf32> to vector<2x64xf32>
    %113 = vector.shape_cast %99 : vector<2x64xf32> to vector<1x2x64xf32>
    tpu.vector_store %arg11[%c1_46, %c0_47, %c0_48], %113 {strides = array<i32>} : memref<2x2x64xf32, #tpu.memory_space<vmem>>, vector<1x2x64xf32>,
    return
  }
}

</mosaic_0001>

<bundles_post_ra>
// kernel: tpu_custom_call.1
= control target key start
LH: loop header
LB: loop body
LE: loop exit
PB: predicated region body
PF: predicated region fallthrough
CT: control target
= control target key end

     0   :  { %17 = vsyncpa [#allocation3], 0  ;;  %s3392_s0 = inlined_call_operand.hbm [shape: bf16[8,2,128], index: 0, kind: input, shape index: {}]   ;;  %s3393_s1 = inlined_call_operand.hbm [shape: f32[2,2,64], index: 1, kind: input, shape index: {}]   ;;  %s3394_s2 = inlined_call_operand.vmem [shape: bf16[128,64], index: 2, kind: input, shape index: {}]   ;;  %s3395_s3 = inlined_call_operand.vmem [shape: bf16[64,64], index: 3, kind: input, shape index: {}]   ;;  %s3396_s4 = inlined_call_operand.vmem [shape: f32[1,64], index: 4, kind: input, shape index: {}]   ;;  %s3397_s5 = inlined_call_operand.vmem [shape: bf16[64,64], index: 5, kind: input, shape index: {}]   ;;  %s3398_s6 = inlined_call_operand.vmem [shape: bf16[64,64], index: 6, kind: input, shape index: {}]   ;;  %s3399_s7 = inlined_call_operand.vmem [shape: f32[1,64], index: 7, kind: input, shape index: {}]   ;;  %s3400_s8 = inlined_call_operand.hbm [shape: bf16[512,384], index: 8, kind: input, shape index: {}]   ;;  %s3401_s9 = inlined_call_operand.vmem [shape: f32[1,384], index: 9, kind: input, shape index: {}]   ;;  %s3402_s10 = inlined_call_operand.hbm [shape: f32[2,384], index: 10, kind: output, shape index: {0}]   ;;  %s3403_s11 = inlined_call_operand.hbm [shape: f32[2,2,64], index: 11, kind: output, shape index: {1}]  }
   0x1   :  { %18 = vsyncpa [#allocation6], 0 }
   0x2   :  { %19 = vsyncpa [#allocation4], 0 }
   0x3   :  { %20 = vsyncpa [#allocation10], 0  ;;  %s2933_s17 = smov [#allocation5]  }
   0x4   :  { %s38_s18 = sshll.u32 %s2933_s17, 4  ;;  %s39_s18 = int_to_ptr.vmem [resolvable:$true] %s38_s18 }
   0x5   :  { %s2833_s19 = scalar_lea.vmem %s39_s18, 64  ;;  %p2838_p1 = scmp.lt.s32.totalorder %s39_s18, %s39_s18 }
   0x6   :  { %p2834_p0 = scmp.ne.s32.totalorder %s39_s18, %s2833_s19  ;;  %p2839_p2 = scmp.lt.s32.totalorder %s2833_s19, %s2833_s19 }
   0x8   :  { %p2840_p3 = por %p2839_p2, %p2838_p1 }
   0xa   :  { %p2841_p4 = pnand %p2840_p3, %p2834_p0 }
   0xc   :  { %2844 = shalt.err (!%p2841_p4)
}
   0xd   :  { %s2934_s20 = smov 32   ;;  %s2935_s21 = smov 2  }
   0xe   :  { %44 = dma.hbm_to_vmem [thread:$0]  %s3393_s1, 64, %s39_s18, [#allocation6], %s2934_s20, %s2934_s20, %s2935_s21  }
   0xf   :  { %s2936_s24 = smov [#allocation2]  }
  0x10   :  { %s26_s25 = sshll.u32 %s2936_s24, 4  ;;  %s27_s25 = int_to_ptr.vmem [resolvable:$true] %s26_s25 }
  0x11   :  { %s2853_s26 = scalar_lea.vmem %s27_s25, 128  ;;  %p2858_p6 = scmp.lt.s32.totalorder %s27_s25, %s27_s25 }
  0x12   :  { %p2854_p5 = scmp.ne.s32.totalorder %s27_s25, %s2853_s26  ;;  %p2859_p7 = scmp.lt.s32.totalorder %s2853_s26, %s2853_s26 }
  0x14   :  { %p2860_p8 = por %p2859_p7, %p2858_p6 }
  0x16   :  { %p2861_p9 = pnand %p2860_p8, %p2854_p5 }
  0x18   :  { %2864 = shalt.err (!%p2861_p9)
}
  0x19   :  { %s2937_s27 = smov 16   ;;  %s2938_s28 = smov 1  }
  0x1a   :  { %32 = dma.hbm_to_vmem [thread:$0]  %s3392_s0, 128, %s27_s25, [#allocation3], %s2937_s27, %s2937_s27, %s2938_s28  }
  0x1b   :  { %s2939_s12 = smov [#allocation7]  }
  0x1c   :  { %s62_s13 = sshll.u32 %s2939_s12, 4  ;;  %s63_s13 = int_to_ptr.vmem [resolvable:$true] %s62_s13 }
  0x1d   :  { %s2873_s1 = scalar_lea.vmem %s63_s13, 12288  ;;  %p2878_p11 = scmp.lt.s32.totalorder %s63_s13, %s63_s13 }
  0x1e   :  { %p2874_p10 = scmp.ne.s32.totalorder %s63_s13, %s2873_s1  ;;  %p2879_p12 = scmp.lt.s32.totalorder %s2873_s1, %s2873_s1 }
  0x20   :  { %p2880_p13 = por %p2879_p12, %p2878_p11 }
  0x22   :  { %p2881_p0 = pnand %p2880_p13, %p2874_p10 }
  0x24   :  { %2884 = shalt.err (!%p2881_p0)
}
  0x25   :  { %s2940_s14 = smov 192   ;;  %s2941_s15 = smov 12  }
  0x26   :  { %68 = dma.hbm_to_vmem [thread:$0]  %s3400_s8, 12288, %s63_s13, [#allocation6], %s2940_s14, %s2940_s14, %s2941_s15  }
  0x27   :  { %2925 = dma.done.wait [#allocation3], 128  }
  0x28   :  { %2926 = vsyncadd [#allocation3], 4294967168 }
  0x29   :  { %2927 = dma.done.wait [#allocation6], 12352  }
  0x2a   :  { %2928 = vsyncadd [#allocation6], 4294954944  ;;  %v2942_v0 = vmov 0.0   ;;  %vm2943_vm0 = vmmov 0   ;;  %v2645_v1 = vld [vmem:[%s3394_s2 + $0x38] sm:$0xff]   ;;  %v2646_v2 = vld [vmem:[%s3394_s2 + $0x30] sm:$0xff]   ;;  %v127_v7 = vlaneseq }
  0x2b   :  { %2395 = vmatprep.subr.bf16.mxu0 %v2942_v0  ;;  %2415 = vmatprep.subr.bf16.mxu1 %v2942_v0  ;;  %v3037_v3 = vld [vmem:[%s3395_s3 + $0x18] sm:$0xff]   ;;  %v2647_v4 = vld [vmem:[%s3394_s2 + $0x28] sm:$0xff]   ;;  %v2944_v5 = vmov 1966171168   ;;  %v3046_v8 = vld [vmem:[%s3395_s3 + $0x10] sm:$0xff]   ;;  %vm293_vm1 = vcmask 523264  }
  0x2c   :  { %2423 = vmatprep.mubr.msk.bf16.mxu1 %vm2943_vm0, %v2942_v0  ;;  %2411 = vmatprep.mubr.msk.bf16.mxu0 %vm2943_vm0, %v2942_v0  ;;  %v125_v6 = vunpack.c.l.s4 %v2944_v5  ;;  %v2648_v9 = vld [vmem:[%s3394_s2 + $0x20] sm:$0xff]   ;;  %v3053_v11 = vshrl.u32 %v127_v7, 7  ;;  %v3059_v12 = vld [vmem:[%s3395_s3 + $0x8] sm:$0xff]   ;;  %v2650_v13 = vld [vmem:[%s3394_s2 + $0x18] sm:$0xff]   ;;  %vm689_vm2 = vcmask 1041408   ;;  %vm691_vm3 = vcmask 1043456  }
  0x2d   :  { %2396 = vmatpush3.bf16.msra.mxu0 %v2645_v1  ;;  %2416 = vmatpush3.bf16.msra.mxu1 %v3037_v3  ;;  %v3069_v14 = vld [vmem:[%s3395_s3] sm:$0xff]   ;;  %v267_v15 = vld [vmem:[#allocation5] sm:$0x3]  ;;  %v2652_v29 = vld [vmem:[%s3394_s2 + $0x10] sm:$0xff]   ;;  %vm693_vm4 = vcmask 1045504   ;;  %vm2086_vm5 = vcmask 523270  }
  0x2e   :  { %2397 = vmatprep.subr.bf16.mxu0 %v2942_v0  ;;  %2417 = vmatprep.subr.bf16.mxu1 %v2942_v0  ;;  %v126_v10 = vunpack.c.0.s8 %v125_v6  ;;  %v81_v16 = vld [vmem:[#allocation2] sm:$0x1]  ;;  %v82_v17 = vld [vmem:[#allocation2 + $0x1] sm:$0x1]  ;;  %v83_v18 = vld [vmem:[#allocation2 + $0x2] sm:$0x1]  ;;  %v268_v30 = vpack.c.bf16 %v267_v15, %v267_v15 }
  0x2f   :  { %v84_v19 = vld [vmem:[#allocation2 + $0x3] sm:$0x1]  ;;  %v85_v20 = vld [vmem:[#allocation2 + $0x4] sm:$0x1]  ;;  %v120_v21 = vcombine.low %v81_v16, %v82_v17  ;;  %v86_v23 = vld [vmem:[#allocation2 + $0x5] sm:$0x1] }
  0x30   :  { %v129_v22 = vsub.s32 %v126_v10, %v3053_v11  ;;  %v87_v24 = vld [vmem:[#allocation2 + $0x6] sm:$0x1]  ;;  %v88_v25 = vld [vmem:[#allocation2 + $0x7] sm:$0x1]  ;;  %v121_v26 = vcombine.low %v83_v18, %v84_v19  ;;  %v122_v27 = vcombine.low %v85_v20, %v86_v23  ;;  %v2654_v35 = vld [vmem:[%s3394_s2 + $0x8] sm:$0xff]   ;;  %s2946_s16 = smov [#allocation9]  }
  0x31   :  { %2398 = vmatpush3.bf16.msra.mxu0 %v2646_v2  ;;  %2418 = vmatpush3.bf16.msra.mxu1 %v3046_v8  ;;  %v123_v28 = vcombine.low %v87_v24, %v88_v25  ;;  %v2656_v38 = vld [vmem:[%s3394_s2] sm:$0xff]   ;;  %s2105_s17 = sshll.u32 %s2946_s16, 4  ;;  %s2106_s17 = int_to_ptr.vmem [resolvable:$true] %s2105_s17 }
  0x32   :  { %2399 = vmatprep.subr.bf16.mxu0 %v2942_v0  ;;  %2419 = vmatprep.subr.bf16.mxu1 %v2942_v0  ;;  %v130_v31 = vrot.slane %v120_v21, %v129_v22  ;;  %v137_v32 = vrot.slane %v121_v26, %v129_v22  ;;  %v144_v33 = vrot.slane %v122_v27, %v129_v22  ;;  %v2122_v46 = vld [vmem:[%s3396_s4] ss:$0 sm:$0xff]  ;;  %s2885_s0 = scalar_lea.vmem %s2106_s17, 64  ;;  %p2890_p2 = scmp.lt.s32.totalorder %s2106_s17, %s2106_s17 }
  0x33   :  { %v151_v34 = vrot.slane %v123_v28, %v129_v22  ;;  %p2886_p1 = scmp.ne.s32.totalorder %s2106_s17, %s2885_s0  ;;  %p2891_p3 = scmp.lt.s32.totalorder %s2885_s0, %s2885_s0 }
  0x34   :  { %v152_v36 = vcombine.low %v130_v31, %v137_v32 }
  0x35   :  { %2400 = vmatpush3.bf16.msra.mxu0 %v2647_v4  ;;  %2420 = vmatpush3.bf16.msra.mxu1 %v3059_v12  ;;  %v153_v37 = vcombine.low %v144_v33, %v151_v34  ;;  %p2892_p4 = por %p2891_p3, %p2890_p2 }
  0x36   :  { %2401 = vmatprep.subr.bf16.mxu0 %v2942_v0  ;;  %2421 = vmatprep.subr.bf16.mxu1 %v2942_v0  ;;  %v160_v39 = vrot.slane %v152_v36, %v129_v22 }
  0x37   :  { %v167_v40 = vrot.slane %v153_v37, %v129_v22  ;;  %p2893_p5 = pnand %p2892_p4, %p2886_p1 }
  0x39   :  { %2402 = vmatpush3.bf16.msra.mxu0 %v2648_v9  ;;  %2422 = vmatpush3.bf16.msra.mxu1 %v3069_v14  ;;  %v168_v41 = vcombine.low %v160_v39, %v167_v40 }
  0x3a   :  { %2403 = vmatprep.subr.bf16.mxu0 %v2942_v0  ;;  %2427 = vmatprep.subr.bf16.mxu1 %v2942_v0 }
  0x3c   :  { %2424 = vmatmul.mubr.msk.bf16.vlgmr.msra.gmra.mxu1 %vm293_vm1, %v268_v30 }
  0x3d   :  { %2404 = vmatpush3.bf16.msra.mxu0 %v2650_v13  ;;  %2428 = vmatpush3.bf16.msra.mxu1 %v3037_v3 }
  0x3e   :  { %2405 = vmatprep.subr.bf16.mxu0 %v2942_v0  ;;  %2429 = vmatprep.subr.bf16.mxu1 %v2942_v0 }
  0x3f   :  { %2435 = vmatprep.mubr.msk.bf16.mxu1 %vm2943_vm0, %v2942_v0 }
  0x41   :  { %2406 = vmatpush3.bf16.msra.mxu0 %v2652_v29  ;;  %2430 = vmatpush3.bf16.msra.mxu1 %v3046_v8 }
  0x42   :  { %2407 = vmatprep.subr.bf16.mxu0 %v2942_v0  ;;  %2431 = vmatprep.subr.bf16.mxu1 %v2942_v0 }
  0x45   :  { %2408 = vmatpush3.bf16.msra.mxu0 %v2654_v35  ;;  %2432 = vmatpush3.bf16.msra.mxu1 %v3059_v12 }
  0x46   :  { %2409 = vmatprep.subr.bf16.mxu0 %v2942_v0  ;;  %2433 = vmatprep.subr.bf16.mxu1 %v2942_v0 }
  0x49   :  { %2410 = vmatpush3.bf16.msra.mxu0 %v2656_v38  ;;  %2434 = vmatpush3.bf16.msra.mxu1 %v3069_v14 }
  0x4a   :  { %2439 = vmatprep.subr.bf16.mxu0 %v2942_v0  ;;  %2451 = vmatprep.subr.bf16.mxu1 %v2942_v0 }
  0x4c   :  { %2412 = vmatmul.mubr.bf16.vlgmr.msra.gmra.mxu0 %v168_v41 }
  0x4d   :  { %2440 = vmatpush3.bf16.msra.mxu0 %v3037_v3  ;;  %2447 = vmatprep.mubr.msk.bf16.mxu0 %vm2943_vm0, %v2942_v0 }
  0x4e   :  { %2441 = vmatprep.subr.bf16.mxu0 %v2942_v0 }
  0x51   :  { %2442 = vmatpush3.bf16.msra.mxu0 %v3046_v8 }
  0x52   :  { %2443 = vmatprep.subr.bf16.mxu0 %v2942_v0 }
  0x55   :  { %2444 = vmatpush3.bf16.msra.mxu0 %v3059_v12 }
  0x56   :  { %2445 = vmatprep.subr.bf16.mxu0 %v2942_v0 }
  0x59   :  { %2446 = vmatpush3.bf16.msra.mxu0 %v3069_v14 }
  0x5a   :  { %2463 = vmatprep.subr.bf16.mxu0 %v2942_v0 }
  0xfc   :  { %v331_v42 = vpop.f32.mrf.mxu1 }
  0xfe   :  { %v2425_v43 = vpop.f32.mrf.mxu1 }
 0x100   :  { %v334_v44 = vpop.f32.mrf.mxu1 }
 0x102   :  { %v2426_v45 = vpop.f32.mrf.mxu1 }
 0x10c   :  { %v252_v47 = vpop.f32.mrf.mxu0 }
 0x10d   :  { %v3114_v48 = vadd.f32 %v2122_v46, %v252_v47 }
 0x10e   :  { %v2413_v49 = vpop.f32.mrf.mxu0 }
 0x10f   :  { %v337_v50 = vadd.f32 %v331_v42, %v3114_v48 }
 0x110   :  { %v255_v51 = vpop.f32.mrf.mxu0 }
 0x111   :  { %2793 = vtanh.f32 %v337_v50  ;;  %v3117_v52 = vadd.f32 %v2122_v46, %v255_v51  ;;  %v3196_v51 = vld [vmem:[%s3398_s6 + $0x18] sm:$0xff]  }
 0x112   :  { %v2414_v53 = vpop.f32.mrf.mxu0 }
 0x113   :  { %v2658_v53 = vld [vmem:[%s3397_s5 + $0x18] sm:$0xff]  }
 0x11e   :  { %v2794_v54 = vpop.eup %2793 }
 0x11f   :  { %v339_v55 = vpack.c.bf16 %v2794_v54, %v2794_v54 }
 0x121   :  { %2436 = vmatmul.mubr.msk.bf16.vlgmr.msra.gmra.mxu1 %vm293_vm1, %v339_v55  ;;  %v2660_v55 = vld [vmem:[%s3397_s5 + $0x10] sm:$0xff]  }
 0x122   :  { %2452 = vmatpush3.bf16.msra.mxu1 %v3037_v3  ;;  %2459 = vmatprep.mubr.msk.bf16.mxu1 %vm2943_vm0, %v2942_v0 }
 0x123   :  { %2453 = vmatprep.subr.bf16.mxu1 %v2942_v0 }
 0x126   :  { %2454 = vmatpush3.bf16.msra.mxu1 %v3046_v8 }
 0x127   :  { %2455 = vmatprep.subr.bf16.mxu1 %v2942_v0 }
 0x12a   :  { %2456 = vmatpush3.bf16.msra.mxu1 %v3059_v12 }
 0x12b   :  { %2457 = vmatprep.subr.bf16.mxu1 %v2942_v0 }
 0x12e   :  { %2458 = vmatpush3.bf16.msra.mxu1 %v3069_v14 }
 0x12f   :  { %2475 = vmatprep.subr.bf16.mxu1 %v2942_v0 }
 0x1e1   :  { %v377_v56 = vpop.f32.mrf.mxu1 }
 0x1e2   :  { %v384_v57 = vrot.slane %v377_v56, 6  ;;  %v3215_v56 = vld [vmem:[%s3398_s6 + $0x8] sm:$0xff]  }
 0x1e3   :  { %v2437_v58 = vpop.f32.mrf.mxu1 }
 0x1e4   :  { %v386_v59 = vadd.f32 %v384_v57, %v3114_v48  ;;  %v2662_v57 = vld [vmem:[%s3397_s5 + $0x8] sm:$0xff]   ;;  %v3226_v58 = vld [vmem:[%s3398_s6] sm:$0xff]  }
 0x1e5   :  { %v380_v60 = vpop.f32.mrf.mxu1 }
 0x1e6   :  { %2795 = vtanh.f32 %v386_v59  ;;  %v791_v59 = vld [vmem:[#allocation5 + $0x2] sm:$0x3] }
 0x1e7   :  { %v2438_v61 = vpop.f32.mrf.mxu1  ;;  %v792_v60 = vpack.c.bf16 %v791_v59, %v791_v59 }
 0x1e8   :  { %v2664_v61 = vld [vmem:[%s3397_s5] sm:$0xff]  }
 0x1f3   :  { %v2796_v62 = vpop.eup %2795 }
 0x1f4   :  { %v388_v63 = vpack.c.bf16 %v2796_v62, %v2796_v62  ;;  %v690_v13 = vsel %vm689_vm2, %v2794_v54, %v2796_v62  ;;  %v3206_v54 = vld [vmem:[%s3398_s6 + $0x10] sm:$0xff]  }
 0x1f6   :  { %v390_v1 = vrot.slane %v388_v63, 1 }
 0x1f8   :  { %2448 = vmatmul.mubr.msk.bf16.vlgmr.msra.gmra.mxu0 %vm293_vm1, %v390_v1 }
 0x1f9   :  { %2464 = vmatpush3.bf16.msra.mxu0 %v3037_v3  ;;  %2471 = vmatprep.mubr.msk.bf16.mxu0 %vm2943_vm0, %v2942_v0 }
 0x1fa   :  { %2465 = vmatprep.subr.bf16.mxu0 %v2942_v0 }
 0x1fd   :  { %2466 = vmatpush3.bf16.msra.mxu0 %v3046_v8 }
 0x1fe   :  { %2467 = vmatprep.subr.bf16.mxu0 %v2942_v0 }
 0x201   :  { %2468 = vmatpush3.bf16.msra.mxu0 %v3059_v12 }
 0x202   :  { %2469 = vmatprep.subr.bf16.mxu0 %v2942_v0 }
 0x205   :  { %2470 = vmatpush3.bf16.msra.mxu0 %v3069_v14 }
 0x206   :  { %2487 = vmatprep.subr.bf16.mxu0 %v2942_v0 }
 0x2b8   :  { %v428_v2 = vpop.f32.mrf.mxu0 }
 0x2b9   :  { %v435_v4 = vrot.slane %v428_v2, 4 }
 0x2ba   :  { %v2449_v5 = vpop.f32.mrf.mxu0 }
 0x2bb   :  { %v437_v6 = vadd.f32 %v435_v4, %v3114_v48 }
 0x2bc   :  { %v431_v7 = vpop.f32.mrf.mxu0 }
 0x2bd   :  { %2797 = vtanh.f32 %v437_v6 }
 0x2be   :  { %v2450_v9 = vpop.f32.mrf.mxu0 }
 0x2ca   :  { %v2798_v10 = vpop.eup %2797 }
 0x2cb   :  { %v439_v15 = vpack.c.bf16 %v2798_v10, %v2798_v10  ;;  %v692_v16 = vsel %vm691_vm3, %v690_v13, %v2798_v10 }
 0x2cd   :  { %v441_v17 = vrot.slane %v439_v15, 2 }
 0x2cf   :  { %2460 = vmatmul.mubr.msk.bf16.vlgmr.msra.gmra.mxu1 %vm293_vm1, %v441_v17 }
 0x2d0   :  { %2476 = vmatpush3.bf16.msra.mxu1 %v3037_v3  ;;  %2483 = vmatprep.mubr.msk.bf16.mxu1 %vm2943_vm0, %v2942_v0 }
 0x2d1   :  { %2477 = vmatprep.subr.bf16.mxu1 %v2942_v0 }
 0x2d4   :  { %2478 = vmatpush3.bf16.msra.mxu1 %v3046_v8 }
 0x2d5   :  { %2479 = vmatprep.subr.bf16.mxu1 %v2942_v0 }
 0x2d8   :  { %2480 = vmatpush3.bf16.msra.mxu1 %v3059_v12 }
 0x2d9   :  { %2481 = vmatprep.subr.bf16.mxu1 %v2942_v0 }
 0x2dc   :  { %2482 = vmatpush3.bf16.msra.mxu1 %v3069_v14 }
 0x2dd   :  { %2499 = vmatprep.subr.bf16.mxu1 %v2942_v0 }
 0x38f   :  { %v479_v18 = vpop.f32.mrf.mxu1 }
 0x390   :  { %v486_v19 = vrot.slane %v479_v18, 2 }
 0x391   :  { %v2461_v20 = vpop.f32.mrf.mxu1 }
 0x392   :  { %v488_v21 = vadd.f32 %v486_v19, %v3114_v48 }
 0x393   :  { %v482_v22 = vpop.f32.mrf.mxu1 }
 0x394   :  { %2799 = vtanh.f32 %v488_v21 }
 0x395   :  { %v2462_v23 = vpop.f32.mrf.mxu1 }
 0x3a1   :  { %v2800_v24 = vpop.eup %2799 }
 0x3a2   :  { %v490_v25 = vpack.c.bf16 %v2800_v24, %v2800_v24  ;;  %v3158_v26 = vsel %vm693_vm4, %v692_v16, %v2800_v24  ;;  %v2143_v16 = vld [vmem:[%s3399_s7] ss:$0 sm:$0xff]  ;;  %s2945_s7 = smov 64  }
 0x3a4   :  { %v492_v27 = vrot.slane %v490_v25, 3 }
 0x3a6   :  { %2472 = vmatmul.mubr.msk.bf16.vlgmr.msra.gmra.mxu0 %vm293_vm1, %v492_v27 }
 0x3a7   :  { %2488 = vmatpush3.bf16.msra.mxu0 %v3037_v3  ;;  %2495 = vmatprep.mubr.msk.bf16.mxu0 %vm2943_vm0, %v2942_v0 }
 0x3a8   :  { %2489 = vmatprep.subr.bf16.mxu0 %v2942_v0 }
 0x3ab   :  { %2490 = vmatpush3.bf16.msra.mxu0 %v3046_v8 }
 0x3ac   :  { %2491 = vmatprep.subr.bf16.mxu0 %v2942_v0 }
 0x3af   :  { %2492 = vmatpush3.bf16.msra.mxu0 %v3059_v12 }
 0x3b0   :  { %2493 = vmatprep.subr.bf16.mxu0 %v2942_v0 }
 0x3b3   :  { %2494 = vmatpush3.bf16.msra.mxu0 %v3069_v14 }
 0x3b4   :  { %2511 = vmatprep.subr.bf16.mxu0 %v2942_v0 }
 0x466   :  { %v530_v28 = vpop.f32.mrf.mxu0 }
 0x467   :  { %v536_v29 = vadd.f32 %v530_v28, %v3117_v52 }
 0x468   :  { %v2473_v30 = vpop.f32.mrf.mxu0 }
 0x469   :  { %2801 = vtanh.f32 %v536_v29 }
 0x46a   :  { %v533_v31 = vpop.f32.mrf.mxu0 }
 0x46c   :  { %v2474_v32 = vpop.f32.mrf.mxu0 }
 0x476   :  { %v2802_v33 = vpop.eup %2801 }
 0x477   :  { %v538_v34 = vpack.c.bf16 %v2802_v33, %v2802_v33 }
 0x479   :  { %2484 = vmatmul.mubr.msk.bf16.vlgmr.msra.gmra.mxu1 %vm293_vm1, %v538_v34 }
 0x47a   :  { %2500 = vmatpush3.bf16.msra.mxu1 %v3037_v3  ;;  %2507 = vmatprep.mubr.msk.bf16.mxu1 %vm2943_vm0, %v2942_v0 }
 0x47b   :  { %2501 = vmatprep.subr.bf16.mxu1 %v2942_v0 }
 0x47e   :  { %2502 = vmatpush3.bf16.msra.mxu1 %v3046_v8 }
 0x47f   :  { %2503 = vmatprep.subr.bf16.mxu1 %v2942_v0 }
 0x482   :  { %2504 = vmatpush3.bf16.msra.mxu1 %v3059_v12 }
 0x483   :  { %2505 = vmatprep.subr.bf16.mxu1 %v2942_v0 }
 0x486   :  { %2506 = vmatpush3.bf16.msra.mxu1 %v3069_v14 }
 0x487   :  { %2523 = vmatprep.subr.bf16.mxu1 %v2942_v0 }
 0x539   :  { %v576_v35 = vpop.f32.mrf.mxu1 }
 0x53a   :  { %v583_v36 = vrot.slane %v576_v35, 6 }
 0x53b   :  { %v2485_v3 = vpop.f32.mrf.mxu1 }
 0x53c   :  { %v585_v37 = vadd.f32 %v583_v36, %v3117_v52 }
 0x53d   :  { %v579_v38 = vpop.f32.mrf.mxu1 }
 0x53e   :  { %2803 = vtanh.f32 %v585_v37 }
 0x53f   :  { %v2486_v39 = vpop.f32.mrf.mxu1 }
 0x54b   :  { %v2804_v40 = vpop.eup %2803 }
 0x54c   :  { %v587_v8 = vpack.c.bf16 %v2804_v40, %v2804_v40  ;;  %v695_v47 = vsel %vm689_vm2, %v2802_v33, %v2804_v40 }
 0x54e   :  { %v589_v41 = vrot.slane %v587_v8, 1 }
 0x550   :  { %2496 = vmatmul.mubr.msk.bf16.vlgmr.msra.gmra.mxu0 %vm293_vm1, %v589_v41 }
 0x551   :  { %2519 = vmatprep.mubr.msk.bf16.mxu0 %vm2943_vm0, %v2942_v0  ;;  %2512 = vmatpush3.bf16.msra.mxu0 %v2658_v53 }
 0x552   :  { %2513 = vmatprep.subr.bf16.mxu0 %v2942_v0 }
 0x555   :  { %2514 = vmatpush3.bf16.msra.mxu0 %v2660_v55 }
 0x556   :  { %2515 = vmatprep.subr.bf16.mxu0 %v2942_v0 }
 0x559   :  { %2516 = vmatpush3.bf16.msra.mxu0 %v2662_v57 }
 0x55a   :  { %2517 = vmatprep.subr.bf16.mxu0 %v2942_v0 }
 0x55d   :  { %2518 = vmatpush3.bf16.msra.mxu0 %v2664_v61 }
 0x55e   :  { %2535 = vmatprep.subr.bf16.mxu0 %v2942_v0 }
 0x610   :  { %v627_v12 = vpop.f32.mrf.mxu0 }
 0x611   :  { %v634_v14 = vrot.slane %v627_v12, 4 }
 0x612   :  { %v2497_v42 = vpop.f32.mrf.mxu0 }
 0x613   :  { %v636_v43 = vadd.f32 %v634_v14, %v3117_v52 }
 0x614   :  { %v630_v44 = vpop.f32.mrf.mxu0 }
 0x615   :  { %2805 = vtanh.f32 %v636_v43 }
 0x616   :  { %v2498_v45 = vpop.f32.mrf.mxu0 }
 0x622   :  { %v2806_v46 = vpop.eup %2805 }
 0x623   :  { %v638_v48 = vpack.c.bf16 %v2806_v46, %v2806_v46  ;;  %v696_v49 = vsel %vm691_vm3, %v695_v47, %v2806_v46 }
 0x625   :  { %v640_v50 = vrot.slane %v638_v48, 2 }
 0x627   :  { %2508 = vmatmul.mubr.msk.bf16.vlgmr.msra.gmra.mxu1 %vm293_vm1, %v640_v50 }
 0x628   :  { %2531 = vmatprep.mubr.msk.bf16.mxu1 %vm2943_vm0, %v2942_v0  ;;  %2524 = vmatpush3.bf16.msra.mxu1 %v3196_v51 }
 0x629   :  { %2525 = vmatprep.subr.bf16.mxu1 %v2942_v0 }
 0x62c   :  { %2526 = vmatpush3.bf16.msra.mxu1 %v3206_v54 }
 0x62d   :  { %2527 = vmatprep.subr.bf16.mxu1 %v2942_v0 }
 0x630   :  { %2528 = vmatpush3.bf16.msra.mxu1 %v3215_v56 }
 0x631   :  { %2529 = vmatprep.subr.bf16.mxu1 %v2942_v0 }
 0x634   :  { %2530 = vmatpush3.bf16.msra.mxu1 %v3226_v58 }
 0x635   :  { %2547 = vmatprep.subr.bf16.mxu1 %v2942_v0 }
 0x637   :  { %2532 = vmatmul.mubr.msk.bf16.vlgmr.msra.gmra.mxu1 %vm293_vm1, %v792_v60 }
 0x638   :  { %2548 = vmatpush3.bf16.msra.mxu1 %v3196_v51  ;;  %2555 = vmatprep.mubr.msk.bf16.mxu1 %vm2943_vm0, %v2942_v0 }
 0x639   :  { %2549 = vmatprep.subr.bf16.mxu1 %v2942_v0 }
 0x63c   :  { %2550 = vmatpush3.bf16.msra.mxu1 %v3206_v54 }
 0x63d   :  { %2551 = vmatprep.subr.bf16.mxu1 %v2942_v0 }
 0x640   :  { %2552 = vmatpush3.bf16.msra.mxu1 %v3215_v56 }
 0x641   :  { %2553 = vmatprep.subr.bf16.mxu1 %v2942_v0 }
 0x644   :  { %2554 = vmatpush3.bf16.msra.mxu1 %v3226_v58 }
 0x645   :  { %2571 = vmatprep.subr.bf16.mxu1 %v2942_v0 }
 0x6e7   :  { %v678_v62 = vpop.f32.mrf.mxu1 }
 0x6e8   :  { %v685_v63 = vrot.slane %v678_v62, 2 }
 0x6e9   :  { %v2509_v1 = vpop.f32.mrf.mxu1 }
 0x6ea   :  { %v687_v2 = vadd.f32 %v685_v63, %v3117_v52  ;;  %v2667_v1 = vld [vmem:[#allocation7 + $0xac] ss:$12 sps:$4 sm:$0xff]  }
 0x6eb   :  { %v681_v4 = vpop.f32.mrf.mxu1 }
 0x6ec   :  { %2807 = vtanh.f32 %v687_v2 }
 0x6ed   :  { %v2510_v5 = vpop.f32.mrf.mxu1 }
 0x6f7   :  { %v854_v52 = vpop.f32.mrf.mxu1 }
 0x6f9   :  { %v2808_v6 = vpop.eup %2807  ;;  %v2533_v10 = vpop.f32.mrf.mxu1 }
 0x6fa   :  { %v697_v7 = vsel %vm693_vm4, %v696_v49, %v2808_v6  ;;  %2087 = vst.msk [vmem:[#allocation9 - $0x6] sm:$0xc0] %vm2086_vm5, %v2808_v6  ;;  %v2665_v10 = vld [vmem:[#allocation7 + $0xa8] ss:$12 sps:$4 sm:$0xff]  }
 0x6fb   :  { %v698_v9 = vpack.c.bf16 %v697_v7, %v3158_v26  ;;  %v857_v13 = vpop.f32.mrf.mxu1 }
 0x6fd   :  { %2520 = vmatmul.mubr.msk.bf16.vlgmr.msra.gmra.mxu0 %vm293_vm1, %v698_v9  ;;  %v2534_v15 = vpop.f32.mrf.mxu1 }
 0x6fe   :  { %2536 = vmatpush3.bf16.msra.mxu0 %v3196_v51  ;;  %2543 = vmatprep.mubr.msk.bf16.mxu0 %vm2943_vm0, %v2942_v0  ;;  %v2670_v15 = vld [vmem:[#allocation7 + $0x94] ss:$12 sps:$4 sm:$0xff]  }
 0x6ff   :  { %2537 = vmatprep.subr.bf16.mxu0 %v2942_v0 }
 0x702   :  { %2538 = vmatpush3.bf16.msra.mxu0 %v3206_v54 }
 0x703   :  { %2539 = vmatprep.subr.bf16.mxu0 %v2942_v0 }
 0x706   :  { %2540 = vmatpush3.bf16.msra.mxu0 %v3215_v56 }
 0x707   :  { %2541 = vmatprep.subr.bf16.mxu0 %v2942_v0 }
 0x70a   :  { %2542 = vmatpush3.bf16.msra.mxu0 %v3226_v58 }
 0x70b   :  { %2559 = vmatprep.subr.bf16.mxu0 %v2942_v0 }
 0x7bd   :  { %v775_v17 = vpop.f32.mrf.mxu0 }
 0x7be   :  { %v776_v18 = vadd.f32 %v2143_v16, %v775_v17  ;;  %v2668_v17 = vld [vmem:[#allocation7 + $0x90] ss:$12 sps:$4 sm:$0xff]  }
 0x7bf   :  { %v2521_v19 = vpop.f32.mrf.mxu0 }
 0x7c0   :  { %v860_v20 = vadd.f32 %v854_v52, %v776_v18  ;;  %v2671_v19 = vld [vmem:[#allocation7 + $0x78] ss:$12 sps:$4 sm:$0xff]  }
 0x7c1   :  { %v778_v21 = vpop.f32.mrf.mxu0 }
 0x7c2   :  { %2809 = vtanh.f32 %v860_v20  ;;  %v3266_v22 = vadd.f32 %v2143_v16, %v778_v21  ;;  %v2676_v20 = vld [vmem:[#allocation7 + $0x64] ss:$12 sps:$4 sm:$0xff]   ;;  %v2674_v21 = vld [vmem:[#allocation7 + $0x60] ss:$12 sps:$4 sm:$0xff]  }
 0x7c3   :  { %v2522_v23 = vpop.f32.mrf.mxu0 }
 0x7c4   :  { %v2679_v23 = vld [vmem:[#allocation7 + $0x4c] ss:$12 sps:$4 sm:$0xff]  }
 0x7cf   :  { %v3268_v24 = vpop.eup %2809 }
 0x7d0   :  { %v862_v25 = vpack.c.bf16 %v3268_v24, %v3268_v24 }
 0x7d2   :  { %2544 = vmatmul.mubr.msk.bf16.vlgmr.msra.gmra.mxu0 %vm293_vm1, %v862_v25  ;;  %v2677_v25 = vld [vmem:[#allocation7 + $0x48] ss:$12 sps:$4 sm:$0xff]  }
 0x7d3   :  { %2560 = vmatpush3.bf16.msra.mxu0 %v3196_v51  ;;  %2567 = vmatprep.mubr.msk.bf16.mxu0 %vm2943_vm0, %v2942_v0 }
 0x7d4   :  { %2561 = vmatprep.subr.bf16.mxu0 %v2942_v0 }
 0x7d7   :  { %2562 = vmatpush3.bf16.msra.mxu0 %v3206_v54 }
 0x7d8   :  { %2563 = vmatprep.subr.bf16.mxu0 %v2942_v0 }
 0x7db   :  { %2564 = vmatpush3.bf16.msra.mxu0 %v3215_v56 }
 0x7dc   :  { %2565 = vmatprep.subr.bf16.mxu0 %v2942_v0 }
 0x7df   :  { %2566 = vmatpush3.bf16.msra.mxu0 %v3226_v58 }
 0x7e0   :  { %2583 = vmatprep.subr.bf16.mxu0 %v2942_v0 }
 0x892   :  { %v900_v26 = vpop.f32.mrf.mxu0 }
 0x893   :  { %v907_v27 = vrot.slane %v900_v26, 6  ;;  %v2682_v26 = vld [vmem:[#allocation7 + $0x34] ss:$12 sps:$4 sm:$0xff]  }
 0x894   :  { %v2545_v28 = vpop.f32.mrf.mxu0 }
 0x895   :  { %v909_v29 = vadd.f32 %v907_v27, %v776_v18  ;;  %v2680_v27 = vld [vmem:[#allocation7 + $0x30] ss:$12 sps:$4 sm:$0xff]  }
 0x896   :  { %v903_v30 = vpop.f32.mrf.mxu0  ;;  %v2685_v28 = vld [vmem:[#allocation7 + $0x1c] ss:$12 sps:$4 sm:$0xff]  }
 0x897   :  { %2811 = vtanh.f32 %v909_v29  ;;  %v2683_v29 = vld [vmem:[#allocation7 + $0x18] ss:$12 sps:$4 sm:$0xff]  }
 0x898   :  { %v2546_v31 = vpop.f32.mrf.mxu0  ;;  %v2688_v30 = vld [vmem:[#allocation7 + $0x4] ss:$12 sps:$4 sm:$0xff]  }
 0x899   :  { %v2686_v31 = vld [vmem:[#allocation7] ss:$12 sps:$4 sm:$0xff]  }
 0x8a4   :  { %v2812_v32 = vpop.eup %2811 }
 0x8a5   :  { %v911_v33 = vpack.c.bf16 %v2812_v32, %v2812_v32  ;;  %v1213_v47 = vrot.slane %v2812_v32, 2  ;;  %v2691_v32 = vld [vmem:[#allocation7 + $0x16c] ss:$12 sps:$4 sm:$0xff]  }
 0x8a7   :  { %v913_v34 = vrot.slane %v911_v33, 1  ;;  %v2689_v33 = vld [vmem:[#allocation7 + $0x168] ss:$12 sps:$4 sm:$0xff]  }
 0x8a9   :  { %2556 = vmatmul.mubr.msk.bf16.vlgmr.msra.gmra.mxu1 %vm293_vm1, %v913_v34  ;;  %v2694_v34 = vld [vmem:[#allocation7 + $0x154] ss:$12 sps:$4 sm:$0xff]  }
 0x8aa   :  { %2572 = vmatpush3.bf16.msra.mxu1 %v3196_v51  ;;  %2579 = vmatprep.mubr.msk.bf16.mxu1 %vm2943_vm0, %v2942_v0 }
 0x8ab   :  { %2573 = vmatprep.subr.bf16.mxu1 %v2942_v0 }
 0x8ae   :  { %2574 = vmatpush3.bf16.msra.mxu1 %v3206_v54 }
 0x8af   :  { %2575 = vmatprep.subr.bf16.mxu1 %v2942_v0 }
 0x8b2   :  { %2576 = vmatpush3.bf16.msra.mxu1 %v3215_v56 }
 0x8b3   :  { %2577 = vmatprep.subr.bf16.mxu1 %v2942_v0 }
 0x8b6   :  { %2578 = vmatpush3.bf16.msra.mxu1 %v3226_v58 }
 0x8b7   :  { %2595 = vmatprep.subr.bf16.mxu1 %v2942_v0 }
 0x969   :  { %v951_v35 = vpop.f32.mrf.mxu1 }
 0x96a   :  { %v958_v36 = vrot.slane %v951_v35, 4  ;;  %v2692_v35 = vld [vmem:[#allocation7 + $0x150] ss:$12 sps:$4 sm:$0xff]  }
 0x96b   :  { %v2557_v3 = vpop.f32.mrf.mxu1 }
 0x96c   :  { %v960_v37 = vadd.f32 %v958_v36, %v776_v18  ;;  %v2697_v36 = vld [vmem:[#allocation7 + $0x13c] ss:$12 sps:$4 sm:$0xff]   ;;  %v2695_v3 = vld [vmem:[#allocation7 + $0x138] ss:$12 sps:$4 sm:$0xff]  }
 0x96d   :  { %v954_v38 = vpop.f32.mrf.mxu1 }
 0x96e   :  { %2813 = vtanh.f32 %v960_v37  ;;  %v2700_v37 = vld [vmem:[#allocation7 + $0x124] ss:$12 sps:$4 sm:$0xff]   ;;  %v2698_v38 = vld [vmem:[#allocation7 + $0x120] ss:$12 sps:$4 sm:$0xff]  }
 0x96f   :  { %v2558_v39 = vpop.f32.mrf.mxu1 }
 0x970   :  { %v2703_v39 = vld [vmem:[#allocation7 + $0x10c] ss:$12 sps:$4 sm:$0xff]  }
 0x97b   :  { %v3294_v40 = vpop.eup %2813 }
 0x97c   :  { %v962_v8 = vpack.c.bf16 %v3294_v40, %v3294_v40 }
 0x97e   :  { %v964_v41 = vrot.slane %v962_v8, 2  ;;  %v2706_v8 = vld [vmem:[#allocation7 + $0xf4] ss:$12 sps:$4 sm:$0xff]  }
 0x980   :  { %2568 = vmatmul.mubr.msk.bf16.vlgmr.msra.gmra.mxu0 %vm293_vm1, %v964_v41  ;;  %v2704_v41 = vld [vmem:[#allocation7 + $0xf0] ss:$12 sps:$4 sm:$0xff]  }
 0x981   :  { %2584 = vmatpush3.bf16.msra.mxu0 %v3196_v51  ;;  %2591 = vmatprep.mubr.msk.bf16.mxu0 %vm2943_vm0, %v2942_v0 }
 0x982   :  { %2585 = vmatprep.subr.bf16.mxu0 %v2942_v0 }
 0x985   :  { %2586 = vmatpush3.bf16.msra.mxu0 %v3206_v54 }
 0x986   :  { %2587 = vmatprep.subr.bf16.mxu0 %v2942_v0 }
 0x989   :  { %2588 = vmatpush3.bf16.msra.mxu0 %v3215_v56 }
 0x98a   :  { %2589 = vmatprep.subr.bf16.mxu0 %v2942_v0 }
 0x98d   :  { %2590 = vmatpush3.bf16.msra.mxu0 %v3226_v58 }
 0x98e   :  { %2607 = vmatprep.subr.bf16.mxu0 %v2942_v0 }
 0xa40   :  { %v1002_v12 = vpop.f32.mrf.mxu0 }
 0xa41   :  { %v1009_v14 = vrot.slane %v1002_v12, 2  ;;  %v2709_v12 = vld [vmem:[#allocation7 + $0xdc] ss:$12 sps:$4 sm:$0xff]  }
 0xa42   :  { %v2569_v42 = vpop.f32.mrf.mxu0 }
 0xa43   :  { %v1011_v43 = vadd.f32 %v1009_v14, %v776_v18  ;;  %v2673_v18 = vld [vmem:[#allocation7 + $0x7c] ss:$12 sps:$4 sm:$0xff]   ;;  %v2707_v14 = vld [vmem:[#allocation7 + $0xd8] ss:$12 sps:$4 sm:$0xff]  }
 0xa44   :  { %v1005_v44 = vpop.f32.mrf.mxu0  ;;  %v2712_v42 = vld [vmem:[#allocation7 + $0xc4] ss:$12 sps:$4 sm:$0xff]  }
 0xa45   :  { %2815 = vtanh.f32 %v1011_v43  ;;  %v2710_v44 = vld [vmem:[#allocation7 + $0xc0] ss:$12 sps:$4 sm:$0xff]  }
 0xa46   :  { %v2570_v45 = vpop.f32.mrf.mxu0 }
 0xa47   :  { %v2713_v45 = vld [vmem:[#allocation7 + $0x170] ss:$12 sps:$4 sm:$0xff]  }
 0xa52   :  { %v2816_v46 = vpop.eup %2815 }
 0xa53   :  { %v1221_v48 = vrot.slane %v2816_v46, 6  ;;  %v1013_v49 = vpack.c.bf16 %v2816_v46, %v2816_v46 }
 0xa55   :  { %v2635_v50 = vpack.i.bf16 %v1213_v47, %v1221_v48  ;;  %v1015_v53 = vrot.slane %v1013_v49, 3  ;;  %v2714_v47 = vld [vmem:[#allocation7 + $0xb0] ss:$12 sps:$4 sm:$0xff]   ;;  %v2715_v49 = vld [vmem:[#allocation7 + $0x158] ss:$12 sps:$4 sm:$0xff]  }
 0xa57   :  { %2636 = vrot.lane.b32.xlu0 %v2635_v50, %s2945_s7  ;;  %2580 = vmatmul.mubr.msk.bf16.vlgmr.msra.gmra.mxu1 %vm293_vm1, %v1015_v53  ;;  %v2716_v50 = vld [vmem:[#allocation7 + $0x98] ss:$12 sps:$4 sm:$0xff]   ;;  %v2717_v53 = vld [vmem:[#allocation7 + $0x140] ss:$12 sps:$4 sm:$0xff]  }
 0xa58   :  { %2596 = vmatpush3.bf16.msra.mxu1 %v3196_v51  ;;  %2603 = vmatprep.mubr.msk.bf16.mxu1 %vm2943_vm0, %v2942_v0 }
 0xa59   :  { %2597 = vmatprep.subr.bf16.mxu1 %v2942_v0 }
 0xa5c   :  { %2598 = vmatpush3.bf16.msra.mxu1 %v3206_v54 }
 0xa5d   :  { %2599 = vmatprep.subr.bf16.mxu1 %v2942_v0 }
 0xa60   :  { %2600 = vmatpush3.bf16.msra.mxu1 %v3215_v56 }
 0xa61   :  { %2601 = vmatprep.subr.bf16.mxu1 %v2942_v0 }
 0xa64   :  { %2602 = vmatpush3.bf16.msra.mxu1 %v3226_v58 }
 0xa65   :  { %1903 = vmatprep.subr.bf16.mxu1 %v2667_v1  ;;  %v2725_v1 = vld [vmem:[#allocation7 + $0xe0] ss:$12 sps:$4 sm:$0xff]  }
 0xac9   :  { %v3336_v9 = vpop.permute.xlu0 %2636 }
 0xaca   :  { %v2639_v43 = vunpack.i.h.bf16 %v3336_v9 }
 0xacc   :  { %v1238_v46 = vsel %vm293_vm1, %v3268_v24, %v2639_v43  ;;  %v2721_v24 = vld [vmem:[#allocation7 + $0x110] ss:$12 sps:$4 sm:$0xff]  }
 0xacd   :  { %v1242_v48 = vpack.c.bf16 %v1238_v46, %v1238_v46  ;;  %v2764_v43 = vld [vmem:[#allocation7 + $0x2a4] ss:$12 sps:$4 sm:$0xff]   ;;  %v2765_v46 = vld [vmem:[#allocation7 + $0x288] ss:$12 sps:$4 sm:$0xff]  }
 0xb17   :  { %v1053_v55 = vpop.f32.mrf.mxu1 }
 0xb18   :  { %v1059_v57 = vadd.f32 %v1053_v55, %v3266_v22  ;;  %v2718_v55 = vld [vmem:[#allocation7 + $0x80] ss:$12 sps:$4 sm:$0xff]  }
 0xb19   :  { %v2581_v59 = vpop.f32.mrf.mxu1 }
 0xb1a   :  { %2817 = vtanh.f32 %v1059_v57  ;;  %v2719_v57 = vld [vmem:[#allocation7 + $0x128] ss:$12 sps:$4 sm:$0xff]  }
 0xb1b   :  { %v1056_v60 = vpop.f32.mrf.mxu1  ;;  %v2720_v59 = vld [vmem:[#allocation7 + $0x68] ss:$12 sps:$4 sm:$0xff]  }
 0xb1c   :  { %v2722_v60 = vld [vmem:[#allocation7 + $0x50] ss:$12 sps:$4 sm:$0xff]  }
 0xb1d   :  { %v2582_v61 = vpop.f32.mrf.mxu1 }
 0xb1e   :  { %v2723_v61 = vld [vmem:[#allocation7 + $0xf8] ss:$12 sps:$4 sm:$0xff]  }
 0xb27   :  { %v3321_v62 = vpop.eup %2817 }
 0xb28   :  { %v1061_v63 = vpack.c.bf16 %v3321_v62, %v3321_v62 }
 0xb2a   :  { %2592 = vmatmul.mubr.msk.bf16.vlgmr.msra.gmra.mxu0 %vm293_vm1, %v1061_v63  ;;  %v2724_v63 = vld [vmem:[#allocation7 + $0x38] ss:$12 sps:$4 sm:$0xff]  }
 0xb2b   :  { %2608 = vmatpush3.bf16.msra.mxu0 %v3196_v51  ;;  %2615 = vmatprep.mubr.msk.bf16.mxu0 %vm2943_vm0, %v2942_v0 }
 0xb2c   :  { %2609 = vmatprep.subr.bf16.mxu0 %v2942_v0 }
 0xb2f   :  { %2610 = vmatpush3.bf16.msra.mxu0 %v3206_v54  ;;  %v2638_v54 = vunpack.i.l.bf16 %v3336_v9 }
 0xb30   :  { %2611 = vmatprep.subr.bf16.mxu0 %v2942_v0 }
 0xb33   :  { %2612 = vmatpush3.bf16.msra.mxu0 %v3215_v56  ;;  %v1218_v56 = vrot.slane %v3294_v40, 4  ;;  %v2701_v40 = vld [vmem:[#allocation7 + $0x108] ss:$12 sps:$4 sm:$0xff]  }
 0xb34   :  { %2613 = vmatprep.subr.bf16.mxu0 %v2942_v0 }
 0xb37   :  { %2614 = vmatpush3.bf16.msra.mxu0 %v3226_v58  ;;  %v1239_v58 = vsel %vm293_vm1, %v1218_v56, %v2638_v54 }
 0xb38   :  { %v3345_v16 = vpack.c.bf16 %v1239_v58, %v1239_v58 }
 0xbea   :  { %v1099_v2 = vpop.f32.mrf.mxu0 }
 0xbeb   :  { %v1106_v4 = vrot.slane %v1099_v2, 6  ;;  %v2726_v2 = vld [vmem:[#allocation7 + $0x20] ss:$12 sps:$4 sm:$0xff]  }
 0xbec   :  { %v2593_v51 = vpop.f32.mrf.mxu0 }
 0xbed   :  { %v1108_v5 = vadd.f32 %v1106_v4, %v3266_v22  ;;  %v2727_v4 = vld [vmem:[#allocation7 + $0xc8] ss:$12 sps:$4 sm:$0xff]  }
 0xbee   :  { %v1102_v6 = vpop.f32.mrf.mxu0  ;;  %v2728_v51 = vld [vmem:[#allocation7 + $0x8] ss:$12 sps:$4 sm:$0xff]  }
 0xbef   :  { %2819 = vtanh.f32 %v1108_v5 }
 0xbf0   :  { %v2594_v7 = vpop.f32.mrf.mxu0 }
 0xbfc   :  { %v3340_v52 = vpop.eup %2819 }
 0xbfd   :  { %v1110_v0 = vpack.c.bf16 %v3340_v52, %v3340_v52 }
 0xbff   :  { %v1112_v13 = vrot.slane %v1110_v0, 1 }
 0xc01   :  { %2604 = vmatmul.mubr.msk.bf16.vlgmr.msra.gmra.mxu1 %vm293_vm1, %v1112_v13 }
 0xc02   :  { %1904 = vmatpush1.bf16.msra.mxu1 %v2665_v10  ;;  %1935 = vmatprep.mubr.bf16.mxu1 %v3345_v16 }
 0xc03   :  { %1905 = vmatprep.subr.bf16.mxu1 %v2670_v15 }
 0xc06   :  { %1906 = vmatpush1.bf16.msra.mxu1 %v2668_v17 }
 0xc07   :  { %1907 = vmatprep.subr.bf16.mxu1 %v2673_v18 }
 0xc0a   :  { %1908 = vmatpush1.bf16.msra.mxu1 %v2671_v19 }
 0xc0b   :  { %1909 = vmatprep.subr.bf16.mxu1 %v2676_v20 }
 0xc0e   :  { %1910 = vmatpush1.bf16.msra.mxu1 %v2674_v21 }
 0xc0f   :  { %1911 = vmatprep.subr.bf16.mxu1 %v2679_v23 }
 0xc12   :  { %1912 = vmatpush1.bf16.msra.mxu1 %v2677_v25  ;;  %v2729_v25 = vld [vmem:[#allocation7 + $0x228] ss:$12 sps:$4 sm:$0xff]  }
 0xc13   :  { %1913 = vmatprep.subr.bf16.mxu1 %v2682_v26  ;;  %v2731_v26 = vld [vmem:[#allocation7 + $0x22c] ss:$12 sps:$4 sm:$0xff]  }
 0xc14   :  { %1944 = vmatprep.subr.bf16.mxu0 %v2731_v26  ;;  %v2788_v26 = vld [vmem:[#allocation7 + $0x1b8] ss:$12 sps:$4 sm:$0xff]  }
 0xc16   :  { %1914 = vmatpush1.bf16.msra.mxu1 %v2680_v27  ;;  %v2734_v27 = vld [vmem:[#allocation7 + $0x214] ss:$12 sps:$4 sm:$0xff]  }
 0xc17   :  { %1915 = vmatprep.subr.bf16.mxu1 %v2685_v28  ;;  %v2732_v28 = vld [vmem:[#allocation7 + $0x210] ss:$12 sps:$4 sm:$0xff]  }
 0xc1a   :  { %1916 = vmatpush1.bf16.msra.mxu1 %v2683_v29  ;;  %v2737_v29 = vld [vmem:[#allocation7 + $0x1fc] ss:$12 sps:$4 sm:$0xff]  }
 0xc1b   :  { %1917 = vmatprep.subr.bf16.mxu1 %v2688_v30  ;;  %v2735_v30 = vld [vmem:[#allocation7 + $0x1f8] ss:$12 sps:$4 sm:$0xff]  }
 0xc1e   :  { %1918 = vmatpush1.bf16.msra.mxu1 %v2686_v31  ;;  %v2740_v31 = vld [vmem:[#allocation7 + $0x1e4] ss:$12 sps:$4 sm:$0xff]  }
 0xc1f   :  { %1919 = vmatprep.subr.bf16.mxu1 %v2691_v32  ;;  %v2738_v32 = vld [vmem:[#allocation7 + $0x1e0] ss:$12 sps:$4 sm:$0xff]  }
 0xc22   :  { %1920 = vmatpush2.bf16.msra.mxu1 %v2689_v33  ;;  %v2743_v33 = vld [vmem:[#allocation7 + $0x1cc] ss:$12 sps:$4 sm:$0xff]  }
 0xc23   :  { %1921 = vmatprep.subr.bf16.mxu1 %v2694_v34  ;;  %v2741_v34 = vld [vmem:[#allocation7 + $0x1c8] ss:$12 sps:$4 sm:$0xff]  }
 0xc26   :  { %1922 = vmatpush2.bf16.msra.mxu1 %v2692_v35  ;;  %v2746_v35 = vld [vmem:[#allocation7 + $0x1b4] ss:$12 sps:$4 sm:$0xff]  }
 0xc27   :  { %1923 = vmatprep.subr.bf16.mxu1 %v2697_v36  ;;  %v2744_v36 = vld [vmem:[#allocation7 + $0x1b0] ss:$12 sps:$4 sm:$0xff]  }
 0xc2a   :  { %1924 = vmatpush2.bf16.msra.mxu1 %v2695_v3  ;;  %v2749_v3 = vld [vmem:[#allocation7 + $0x19c] ss:$12 sps:$4 sm:$0xff]  }
 0xc2b   :  { %1925 = vmatprep.subr.bf16.mxu1 %v2700_v37  ;;  %v2747_v37 = vld [vmem:[#allocation7 + $0x198] ss:$12 sps:$4 sm:$0xff]  }
 0xc2e   :  { %1926 = vmatpush2.bf16.msra.mxu1 %v2698_v38  ;;  %v2752_v38 = vld [vmem:[#allocation7 + $0x184] ss:$12 sps:$4 sm:$0xff]  }
 0xc2f   :  { %1927 = vmatprep.subr.bf16.mxu1 %v2703_v39  ;;  %v2750_v39 = vld [vmem:[#allocation7 + $0x180] ss:$12 sps:$4 sm:$0xff]  }
 0xc32   :  { %1928 = vmatpush2.bf16.msra.mxu1 %v2701_v40  ;;  %v2755_v40 = vld [vmem:[#allocation7 + $0x2ec] ss:$12 sps:$4 sm:$0xff]  }
 0xc33   :  { %1929 = vmatprep.subr.bf16.mxu1 %v2706_v8  ;;  %v2753_v8 = vld [vmem:[#allocation7 + $0x2e8] ss:$12 sps:$4 sm:$0xff]  }
 0xc36   :  { %1930 = vmatpush2.bf16.msra.mxu1 %v2704_v41  ;;  %v2758_v41 = vld [vmem:[#allocation7 + $0x2d4] ss:$12 sps:$4 sm:$0xff]  }
 0xc37   :  { %1931 = vmatprep.subr.bf16.mxu1 %v2709_v12  ;;  %v2756_v12 = vld [vmem:[#allocation7 + $0x2d0] ss:$12 sps:$4 sm:$0xff]  }
 0xc3a   :  { %1932 = vmatpush2.bf16.msra.mxu1 %v2707_v14  ;;  %v2761_v14 = vld [vmem:[#allocation7 + $0x2bc] ss:$12 sps:$4 sm:$0xff]  }
 0xc3b   :  { %1933 = vmatprep.subr.bf16.mxu1 %v2712_v42  ;;  %v2759_v42 = vld [vmem:[#allocation7 + $0x2b8] ss:$12 sps:$4 sm:$0xff]  }
 0xc3e   :  { %1934 = vmatpush2.bf16.msra.mxu1 %v2710_v44  ;;  %v2762_v44 = vld [vmem:[#allocation7 + $0x2a0] ss:$12 sps:$4 sm:$0xff]  }
 0xc3f   :  { %2351 = vmatprep.subr.bf16.mxu1 %v2713_v45  ;;  %v2767_v45 = vld [vmem:[#allocation7 + $0x28c] ss:$12 sps:$4 sm:$0xff]  }
 0xc41   :  { %1936 = vmatmul.mubr.bf16.vlgmr.msra.gmra.mxu1 %v1242_v48 }
 0xc42   :  { %2352 = vmatpush3.bf16.msra.mxu1 %v2714_v47  ;;  %2017 = vmatprep.mubr.bf16.mxu1 %v3345_v16  ;;  %v2770_v47 = vld [vmem:[#allocation7 + $0x274] ss:$12 sps:$4 sm:$0xff]  }
 0xc43   :  { %2353 = vmatprep.subr.bf16.mxu1 %v2715_v49  ;;  %v2773_v49 = vld [vmem:[#allocation7 + $0x25c] ss:$12 sps:$4 sm:$0xff]  }
 0xc46   :  { %2354 = vmatpush3.bf16.msra.mxu1 %v2716_v50  ;;  %v2771_v50 = vld [vmem:[#allocation7 + $0x258] ss:$12 sps:$4 sm:$0xff]  }
 0xc47   :  { %2355 = vmatprep.subr.bf16.mxu1 %v2717_v53 }
 0xc4a   :  { %2356 = vmatpush3.bf16.msra.mxu1 %v2718_v55 }
 0xc4b   :  { %2357 = vmatprep.subr.bf16.mxu1 %v2719_v57 }
 0xc4e   :  { %2358 = vmatpush3.bf16.msra.mxu1 %v2720_v59 }
 0xc4f   :  { %2359 = vmatprep.subr.bf16.mxu1 %v2721_v24 }
 0xc52   :  { %2360 = vmatpush3.bf16.msra.mxu1 %v2722_v60 }
 0xc53   :  { %2361 = vmatprep.subr.bf16.mxu1 %v2723_v61  ;;  %v2776_v61 = vld [vmem:[#allocation7 + $0x244] ss:$12 sps:$4 sm:$0xff]  }
 0xc56   :  { %2362 = vmatpush3.bf16.msra.mxu1 %v2724_v63  ;;  %v2774_v63 = vld [vmem:[#allocation7 + $0x240] ss:$12 sps:$4 sm:$0xff]  }
 0xc57   :  { %2363 = vmatprep.subr.bf16.mxu1 %v2725_v1  ;;  %v2777_v1 = vld [vmem:[#allocation7 + $0x2f0] ss:$12 sps:$4 sm:$0xff]  }
 0xc5a   :  { %2364 = vmatpush3.bf16.msra.mxu1 %v2726_v2 }
 0xc5b   :  { %2365 = vmatprep.subr.bf16.mxu1 %v2727_v4  ;;  %v1226_v4 = vrot.slane %v3340_v52, 2  ;;  %v2779_v52 = vld [vmem:[#allocation7 + $0x2d8] ss:$12 sps:$4 sm:$0xff]  }
 0xc5e   :  { %2366 = vmatpush3.bf16.msra.mxu1 %v2728_v51 }
 0xc61   :  { %2018 = vmatmul.mubr.bf16.vlgmr.msra.gmra.mxu1 %v1242_v48  ;;  %v2768_v48 = vld [vmem:[#allocation7 + $0x270] ss:$12 sps:$4 sm:$0xff]  }
 0xcc1   :  { %v1150_v5 = vpop.f32.mrf.mxu1 }
 0xcc2   :  { %v1157_v6 = vrot.slane %v1150_v5, 4 }
 0xcc3   :  { %v2605_v7 = vpop.f32.mrf.mxu1 }
 0xcc4   :  { %v1159_v9 = vadd.f32 %v1157_v6, %v3266_v22 }
 0xcc5   :  { %v1153_v54 = vpop.f32.mrf.mxu1 }
 0xcc6   :  { %2821 = vtanh.f32 %v1159_v9 }
 0xcc7   :  { %v2606_v56 = vpop.f32.mrf.mxu1 }
 0xcd3   :  { %v3354_v0 = vpop.eup %2821 }
 0xcd4   :  { %v1161_v58 = vpack.c.bf16 %v3354_v0, %v3354_v0  ;;  %v1231_v9 = vrot.slane %v3354_v0, 4  ;;  %v2783_v0 = vld [vmem:[#allocation7 + $0x2a8] ss:$12 sps:$4 sm:$0xff]  }
 0xcd6   :  { %v1163_v10 = vrot.slane %v1161_v58, 2 }
 0xcd8   :  { %2616 = vmatmul.mubr.msk.bf16.vlgmr.msra.gmra.mxu0 %vm293_vm1, %v1163_v10 }
 0xcd9   :  { %1945 = vmatpush1.bf16.msra.mxu0 %v2729_v25  ;;  %v2787_v25 = vld [vmem:[#allocation7 + $0x278] ss:$12 sps:$4 sm:$0xff]  }
 0xcda   :  { %1946 = vmatprep.subr.bf16.mxu0 %v2734_v27  ;;  %v2789_v27 = vld [vmem:[#allocation7 + $0x260] ss:$12 sps:$4 sm:$0xff]  }
 0xcdd   :  { %1947 = vmatpush1.bf16.msra.mxu0 %v2732_v28  ;;  %v2790_v28 = vld [vmem:[#allocation7 + $0x1a0] ss:$12 sps:$4 sm:$0xff]  }
 0xcde   :  { %1948 = vmatprep.subr.bf16.mxu0 %v2737_v29  ;;  %v2791_v29 = vld [vmem:[#allocation7 + $0x248] ss:$12 sps:$4 sm:$0xff]  }
 0xce1   :  { %1949 = vmatpush1.bf16.msra.mxu0 %v2735_v30  ;;  %v2792_v30 = vld [vmem:[#allocation7 + $0x188] ss:$12 sps:$4 sm:$0xff]  }
 0xce2   :  { %1950 = vmatprep.subr.bf16.mxu0 %v2740_v31 }
 0xce5   :  { %1951 = vmatpush1.bf16.msra.mxu0 %v2738_v32 }
 0xce6   :  { %1952 = vmatprep.subr.bf16.mxu0 %v2743_v33 }
 0xce9   :  { %1953 = vmatpush1.bf16.msra.mxu0 %v2741_v34 }
 0xcea   :  { %1954 = vmatprep.subr.bf16.mxu0 %v2746_v35 }
 0xced   :  { %1955 = vmatpush1.bf16.msra.mxu0 %v2744_v36 }
 0xcee   :  { %1956 = vmatprep.subr.bf16.mxu0 %v2749_v3 }
 0xcf1   :  { %1957 = vmatpush1.bf16.msra.mxu0 %v2747_v37 }
 0xcf2   :  { %1958 = vmatprep.subr.bf16.mxu0 %v2752_v38 }
 0xcf5   :  { %1959 = vmatpush1.bf16.msra.mxu0 %v2750_v39 }
 0xcf6   :  { %1960 = vmatprep.subr.bf16.mxu0 %v2755_v40 }
 0xcf9   :  { %1961 = vmatpush2.bf16.msra.mxu0 %v2753_v8 }
 0xcfa   :  { %1962 = vmatprep.subr.bf16.mxu0 %v2758_v41 }
 0xcfd   :  { %1963 = vmatpush2.bf16.msra.mxu0 %v2756_v12 }
 0xcfe   :  { %1964 = vmatprep.subr.bf16.mxu0 %v2761_v14 }
 0xd01   :  { %v3359_v13 = vpop.f32.mrf.mxu1  ;;  %1965 = vmatpush2.bf16.msra.mxu0 %v2759_v42 }
 0xd02   :  { %1966 = vmatprep.subr.bf16.mxu0 %v2764_v43 }
 0xd03   :  { %v3361_v15 = vpop.f32.mrf.mxu1 }
 0xd05   :  { %v1941_v16 = vpop.f32.mrf.mxu1  ;;  %1967 = vmatpush2.bf16.msra.mxu0 %v2762_v44 }
 0xd06   :  { %1968 = vmatprep.subr.bf16.mxu0 %v2767_v45  ;;  %v2778_v16 = vld [vmem:[#allocation7 + $0x230] ss:$12 sps:$4 sm:$0xff]  }
 0xd07   :  { %v1942_v17 = vpop.f32.mrf.mxu1 }
 0xd08   :  { %v2780_v17 = vld [vmem:[#allocation7 + $0x218] ss:$12 sps:$4 sm:$0xff]  }
 0xd09   :  { %1969 = vmatpush2.bf16.msra.mxu0 %v2765_v46 }
 0xd0a   :  { %1970 = vmatprep.subr.bf16.mxu0 %v2770_v47 }
 0xd0d   :  { %1971 = vmatpush2.bf16.msra.mxu0 %v2768_v48 }
 0xd0e   :  { %1972 = vmatprep.subr.bf16.mxu0 %v2773_v49 }
 0xd11   :  { %1973 = vmatpush2.bf16.msra.mxu0 %v2771_v50 }
 0xd12   :  { %1974 = vmatprep.subr.bf16.mxu0 %v2776_v61 }
 0xd15   :  { %1975 = vmatpush2.bf16.msra.mxu0 %v2774_v63 }
 0xd16   :  { %2373 = vmatprep.subr.bf16.mxu0 %v2777_v1 }
 0xd21   :  { %v2367_v18 = vpop.f32.mrf.mxu1 }
 0xd23   :  { %v2368_v19 = vpop.f32.mrf.mxu1 }
 0xd24   :  { %v3363_v20 = vadd.f32 %v2368_v19, %v2367_v18  ;;  %v2781_v18 = vld [vmem:[#allocation7 + $0x2c0] ss:$12 sps:$4 sm:$0xff]  }
 0xd25   :  { %v2370_v21 = vpop.f32.mrf.mxu1  ;;  %v2782_v19 = vld [vmem:[#allocation7 + $0x200] ss:$12 sps:$4 sm:$0xff]  }
 0xd26   :  { %v2784_v21 = vld [vmem:[#allocation7 + $0x1e8] ss:$12 sps:$4 sm:$0xff]  }
 0xd27   :  { %v2371_v23 = vpop.f32.mrf.mxu1 }
 0xd28   :  { %v2786_v23 = vld [vmem:[#allocation7 + $0x1d0] ss:$12 sps:$4 sm:$0xff]  }
 0xd98   :  { %v1201_v53 = vpop.f32.mrf.mxu0 }
 0xd99   :  { %v1208_v55 = vrot.slane %v1201_v53, 2 }
 0xd9a   :  { %v2617_v57 = vpop.f32.mrf.mxu0 }
 0xd9b   :  { %v1210_v59 = vadd.f32 %v1208_v55, %v3266_v22 }
 0xd9c   :  { %v1204_v24 = vpop.f32.mrf.mxu0 }
 0xd9d   :  { %2823 = vtanh.f32 %v1210_v59 }
 0xd9e   :  { %v2618_v60 = vpop.f32.mrf.mxu0 }
 0xdaa   :  { %v2824_v2 = vpop.eup %2823 }
 0xdab   :  { %v1234_v51 = vrot.slane %v2824_v2, 6  ;;  %2089 = vst.msk [vmem:[#allocation9 - $0x4] sm:$0xc0] %vm2086_vm5, %v2824_v2 }
 0xdad   :  { %v2640_v5 = vpack.i.bf16 %v1226_v4, %v1234_v51 }
 0xdaf   :  { %2641 = vrot.lane.b32.xlu0 %v2640_v5, %s2945_s7 }
 0xe21   :  { %v2642_v6 = vpop.permute.xlu0 %2641 }
 0xe22   :  { %v2644_v22 = vunpack.i.h.bf16 %v2642_v6  ;;  %v2643_v7 = vunpack.i.l.bf16 %v2642_v6 }
 0xe24   :  { %v1240_v54 = vsel %vm293_vm1, %v3321_v62, %v2644_v22  ;;  %v1241_v56 = vsel %vm293_vm1, %v1231_v9, %v2643_v7  ;;  %v2785_v62 = vld [vmem:[#allocation7 + $0x290] ss:$12 sps:$4 sm:$0xff]  }
 0xe25   :  { %v1244_v58 = vpack.c.bf16 %v1240_v54, %v1240_v54  ;;  %v1245_v10 = vpack.c.bf16 %v1241_v56, %v1241_v56 }
 0xe27   :  { %1976 = vmatprep.mubr.bf16.mxu0 %v1245_v10 }
 0xe28   :  { %1977 = vmatmul.mubr.bf16.vlgmr.msra.gmra.mxu0 %v1244_v58 }
 0xe29   :  { %2374 = vmatpush3.bf16.msra.mxu0 %v2778_v16  ;;  %2057 = vmatprep.mubr.bf16.mxu0 %v1245_v10 }
 0xe2a   :  { %2375 = vmatprep.subr.bf16.mxu0 %v2779_v52 }
 0xe2d   :  { %2376 = vmatpush3.bf16.msra.mxu0 %v2780_v17 }
 0xe2e   :  { %2377 = vmatprep.subr.bf16.mxu0 %v2781_v18 }
 0xe31   :  { %2378 = vmatpush3.bf16.msra.mxu0 %v2782_v19 }
 0xe32   :  { %2379 = vmatprep.subr.bf16.mxu0 %v2783_v0 }
 0xe35   :  { %2380 = vmatpush3.bf16.msra.mxu0 %v2784_v21 }
 0xe36   :  { %2381 = vmatprep.subr.bf16.mxu0 %v2785_v62 }
 0xe39   :  { %2382 = vmatpush3.bf16.msra.mxu0 %v2786_v23 }
 0xe3a   :  { %2383 = vmatprep.subr.bf16.mxu0 %v2787_v25 }
 0xe3d   :  { %2384 = vmatpush3.bf16.msra.mxu0 %v2788_v26 }
 0xe3e   :  { %2385 = vmatprep.subr.bf16.mxu0 %v2789_v27 }
 0xe41   :  { %2386 = vmatpush3.bf16.msra.mxu0 %v2790_v28 }
 0xe42   :  { %2387 = vmatprep.subr.bf16.mxu0 %v2791_v29 }
 0xe45   :  { %2388 = vmatpush3.bf16.msra.mxu0 %v2792_v30 }
 0xe48   :  { %2058 = vmatmul.mubr.bf16.vlgmr.msra.gmra.mxu0 %v1244_v58 }
 0xe49   :  { %2896 = shalt.err (!%p2893_p5)
}
 0xe4a   :  { %2111 = dma.vmem_to_hbm [thread:$0]  %s2106_s17, 64, %s3403_s11, [#allocation10], %s2934_s20, %s2934_s20, %s2935_s21   ;;  %v1378_v31 = vsub.s32 0, %v3053_v11  ;;  %v1382_v32 = vsub.s32 1, %v3053_v11  ;;  %v1386_v14 = vsub.s32 2, %v3053_v11 }
 0xe4b   :  { %v1374_v33 = vld [vmem:[%s3401_s9] sm:$0x7]  ;;  %v2947_v42 = vmov 1983009808   ;;  %s2948_s9 = smov [#allocation8]  }
 0xe4c   :  { %v1379_v34 = vrot.slane %v1374_v33, %v1378_v31  ;;  %v1383_v35 = vrot.slane %v1374_v33, %v1382_v32  ;;  %v2070_v43 = vunpack.c.l.s4 %v2947_v42  ;;  %v1387_v44 = vrot.slane %v1374_v33, %v1386_v14  ;;  %s2096_s11 = sshll.u32 %s2948_s9, 4  ;;  %s2097_s11 = int_to_ptr.vmem [resolvable:$true] %s2096_s11 }
 0xe4d   :  { %s2905_s20 = scalar_lea.vmem %s2097_s11, 96  ;;  %p2910_p7 = scmp.lt.s32.totalorder %s2097_s11, %s2097_s11 }
 0xe4e   :  { %v1938_v3 = vadd.f32 %v3359_v13, %v1379_v34  ;;  %v1940_v37 = vadd.f32 %v3361_v15, %v1383_v35  ;;  %v2071_v45 = vunpack.c.0.s8 %v2070_v43  ;;  %v2020_v48 = vadd.f32 %v3363_v20, %v1387_v44  ;;  %p2906_p6 = scmp.ne.s32.totalorder %s2097_s11, %s2905_s20  ;;  %p2911_p8 = scmp.lt.s32.totalorder %s2905_s20, %s2905_s20 }
 0xe50   :  { %v2074_v13 = vsub.s32 %v2071_v45, %v3053_v11  ;;  %p2912_p9 = por %p2911_p8, %p2910_p7 }
 0xe52   :  { %p2913_p10 = pnand %p2912_p9, %p2906_p6 }
 0xee8   :  { %v1978_v36 = vpop.f32.mrf.mxu0 }
 0xee9   :  { %v1979_v39 = vadd.f32 %v1978_v36, %v1938_v3 }
 0xeea   :  { %v1980_v38 = vpop.f32.mrf.mxu0 }
 0xeeb   :  { %v1981_v40 = vadd.f32 %v1980_v38, %v1940_v37 }
 0xeec   :  { %v1982_v8 = vpop.f32.mrf.mxu0 }
 0xeed   :  { %v2068_v41 = vcombine.low %v1979_v39, %v1981_v40 }
 0xeee   :  { %v1983_v12 = vpop.f32.mrf.mxu0 }
 0xeef   :  { %v2075_v55 = vrot.slane %v2068_v41, %v2074_v13 }
 0xf08   :  { %v2389_v46 = vpop.f32.mrf.mxu0 }
 0xf0a   :  { %v2390_v47 = vpop.f32.mrf.mxu0 }
 0xf0b   :  { %v2391_v49 = vadd.f32 %v2390_v47, %v2389_v46 }
 0xf0c   :  { %v2392_v15 = vpop.f32.mrf.mxu0 }
 0xf0d   :  { %v2060_v50 = vadd.f32 %v2391_v49, %v2020_v48 }
 0xf0e   :  { %v2393_v53 = vpop.f32.mrf.mxu0 }
 0xf0f   :  { %v2082_v57 = vrot.slane %v2060_v50, %v2074_v13 }
 0xf11   :  { %v2083_v59 = vcombine.low %v2075_v55, %v2082_v57 }
 0xf13   :  { %2085 = vst [vmem:[#allocation8] sm:$0x3f] %v2083_v59 }
 0xf14   :  { %2916 = shalt.err (!%p2913_p10)
}
 0xf15   :  { %2099 = dma.vmem_to_hbm [thread:$0]  %s2097_s11, 96, %s3402_s10, [#allocation4]  }
 0xf16   :  { %2929 = dma.done.wait [#allocation4], 96  }
 0xf17   :  { %2930 = vsyncadd [#allocation4], 4294967200 }
 0xf18   :  { %2931 = dma.done.wait [#allocation10], 64  }
 0xf19   :  { %2932 = vsyncadd [#allocation10], 4294967232 }
 0xf1a   :  { %2118 = vsyncpa [#allocation3], 1 }
 0xf1b   :  { %2119 = vsyncpa [#allocation6], 1 }
 0xf1c   :  { %2120 = vsyncpa [#allocation4], 1 }
 0xf1d   :  { %2121 = vsyncpa [#allocation10], 1 }

</bundles_post_ra>
